<compile_context>
chip_gen: v6e
topology: v6e:2x2x1
jax: 0.10.0
libtpu: 0.0.40
codegen_flags: <defaults>
</compile_context>

<pallas_src>
import numpy as np

import jax
import jax.numpy as jnp
from jax import lax
from jax.experimental import pallas as pl
from jax.experimental.pallas import tpu as pltpu


# ---------------------------------------------------------------------------
# Static configuration of this BodyBuilder instantiation
# ---------------------------------------------------------------------------
C_IN, H, W = 4, 16, 16          # input channels / spatial size
C1, C2 = 8, 8                   # conv output channels
F1, F2 = 32, 16                 # linear layer widths
K, PAD = 3, 1                   # 3x3 conv, padding=1, stride=1
HP = H + 2 * PAD                # H-padded rows
CW0 = C_IN * W                  # 64  : conv1 input lane width  (c_in * W)
CW1 = C1 * W                    # 128 : conv1 output / conv2 input lane width
CW2 = C2 * W                    # 128 : conv2 output lane width

# Toeplitz selector E[kw, w_in, w_out] = 1 iff w_in == w_out + kw - PAD (in range).
# Turns 3x3 conv weights into banded matmul weights at prep time (kw taps and the
# W zero-padding are folded into the band structure).
_E = np.zeros((K, W, W), np.float32)
for _kw in range(K):
    for _wo in range(W):
        _wi = _wo + _kw - PAD
        if 0 <= _wi < W:
            _E[_kw, _wi, _wo] = 1.0


# ---------------------------------------------------------------------------
# One-time parameter re-layout (done once, outside the jit forward).
# ---------------------------------------------------------------------------
def prepare_params(params):
    e = jnp.asarray(_E)

    def banded(w_hwio, cin, cout):
        # (K, K, Cin, Cout) -> (kh, cin, w_in, cout, w_out) -> (K*Cin*W, Cout*W)
        b = jnp.einsum("kio,hkcd->hcido", e, w_hwio)
        return b.reshape(K * cin * W, cout * W)

    # torch NCHW flatten order: row index of w3 is c2*H*W + h*W + w.
    # Kernel flatten order is h*C2*W + c2*W + w, so permute rows once.
    w3p = jnp.transpose(
        params["w3"].reshape(C2, H, W, F1), (1, 0, 2, 3)
    ).reshape(H * C2 * W, F1)                          # (2048, F1)

    return {
        "w1b": banded(params["w1"], C_IN, C1),         # (192, 128)
        "b1t": jnp.repeat(params["b1"], W).reshape(1, CW1),
        "w2b": banded(params["w2"], C1, C2),           # (384, 128)
        "b2t": jnp.repeat(params["b2"], W).reshape(1, CW2),
        "w3p": w3p,                                    # (2048, 32)
        "b3r": params["b3"].reshape(1, F1),
        "w4": params["w4"],                            # (32, 16)
        "b4r": params["b4"].reshape(1, F2),
    }


# ---------------------------------------------------------------------------
# Single fused forward kernel: 4 matmuls total, everything VMEM-resident.
# ---------------------------------------------------------------------------
def _fused_torso_kernel(x_ref, w1_ref, b1_ref, w2_ref, b2_ref,
                        w3_ref, b3_ref, w4_ref, b4_ref,
                        o_ref,
                        pad1_ref, cat1_ref, pad2_ref, cat2_ref, flat_ref):
    nb = x_ref.shape[0]

    # ---- conv1 input: zero ONLY the pad stripes, copy the lane-dense interior.
    #      (Scratch persists across grid steps, so stripes are rewritten each call.)
    pad1_ref[:, :PAD, :] = jnp.zeros((nb, PAD, CW0), jnp.float32)
    pad1_ref[:, PAD + H:, :] = jnp.zeros((nb, HP - PAD - H, CW0), jnp.float32)
    pad1_ref[:, PAD:PAD + H, :] = x_ref[...]                  # (nb, H, 64)

    # ---- conv1 operand: concat the K shifted slabs -> (nb*H, 192).
    for kh in range(K):
        cat1_ref[:, kh * CW0:(kh + 1) * CW0] = (
            pad1_ref[:, kh:kh + H, :].reshape(nb * H, CW0))

    # ---- conv1 + bias + ReLU: ONE (nb*H, 192) x (192, 128) matmul.
    h1 = jnp.dot(cat1_ref[...], w1_ref[...], preferred_element_type=jnp.float32)
    h1 = jnp.maximum(h1 + b1_ref[...], 0.0)                   # (nb*H, 128)

    # ---- conv2 input: pad stripes + interior (already channel-interleaved).
    pad2_ref[:, :PAD, :] = jnp.zeros((nb, PAD, CW1), jnp.float32)
    pad2_ref[:, PAD + H:, :] = jnp.zeros((nb, HP - PAD - H, CW1), jnp.float32)
    pad2_ref[:, PAD:PAD + H, :] = h1.reshape(nb, H, CW1)

    # ---- conv2 operand: concat the K shifted slabs -> (nb*H, 384).
    for kh in range(K):
        cat2_ref[:, kh * CW1:(kh + 1) * CW1] = (
            pad2_ref[:, kh:kh + H, :].reshape(nb * H, CW1))

    # ---- conv2 + bias + ReLU: ONE (nb*H, 384) x (384, 128) matmul.
    h2 = jnp.dot(cat2_ref[...], w2_ref[...], preferred_element_type=jnp.float32)
    h2 = jnp.maximum(h2 + b2_ref[...], 0.0).reshape(nb, H, CW2)

    # ---- flatten (torch NCHW ordering folded into w3p): 16 lane-dense stores
    #      into a (nb, 2048) scratch instead of a risky sublane->lane reshape.
    for h in range(H):
        flat_ref[:, h * CW2:(h + 1) * CW2] = h2[:, h, :]

    # ---- linear1 + bias + ReLU: ONE (nb, 2048) x (2048, 32) matmul.
    y1 = jnp.dot(flat_ref[...], w3_ref[...], preferred_element_type=jnp.float32)
    y1 = jnp.maximum(y1 + b3_ref[...], 0.0)                   # (nb, 32)

    # ---- linear2 + bias + tanh (output activation).
    y2 = jnp.dot(y1, w4_ref[...], preferred_element_type=jnp.float32) + b4_ref[...]
    o_ref[...] = jnp.tanh(y2)                                 # (nb, 16)


def body_builder_forward(x_nchw, prep, *, batch_block=8):
    """Full BodyBuilder forward: one pallas_call, batch-tiled grid."""
    N = x_nchw.shape[0]
    bn = min(batch_block, N)
    n_pad = (-N) % bn

    # One-time relayout: NCHW -> (N, H, C_IN*W), lane index = c*W + w (matches w1b).
    x = jnp.transpose(x_nchw, (0, 2, 1, 3)).reshape(N, H, CW0)
    if n_pad:
        x = jnp.concatenate([x, jnp.zeros((n_pad, H, CW0), x.dtype)], axis=0)
    npad = N + n_pad

    const2 = lambda i: (0, 0)
    out = pl.pallas_call(
        _fused_torso_kernel,
        out_shape=jax.ShapeDtypeStruct((npad, F2), jnp.float32),
        grid_spec=pltpu.PrefetchScalarGridSpec(
            num_scalar_prefetch=0,
            grid=(npad // bn,),
            in_specs=[
                pl.BlockSpec((bn, H, CW0), lambda i: (i, 0, 0)),   # activations
                pl.BlockSpec((K * CW0, CW1), const2),              # w1b (resident)
                pl.BlockSpec((1, CW1), const2),                    # b1t
                pl.BlockSpec((K * CW1, CW2), const2),              # w2b
                pl.BlockSpec((1, CW2), const2),                    # b2t
                pl.BlockSpec((H * CW2, F1), const2),               # w3p
                pl.BlockSpec((1, F1), const2),                     # b3r
                pl.BlockSpec((F1, F2), const2),                    # w4
                pl.BlockSpec((1, F2), const2),                     # b4r
            ],
            out_specs=pl.BlockSpec((bn, F2), lambda i: (i, 0)),
            scratch_shapes=[
                pltpu.VMEM((bn, HP, CW0), jnp.float32),      # H-padded conv1 input
                pltpu.VMEM((bn * H, K * CW0), jnp.float32),  # conv1 concat operand
                pltpu.VMEM((bn, HP, CW1), jnp.float32),      # H-padded conv2 input
                pltpu.VMEM((bn * H, K * CW1), jnp.float32),  # conv2 concat operand
                pltpu.VMEM((bn, H * CW2), jnp.float32),      # flattened features
            ],
        ),
        compiler_params=pltpu.CompilerParams(
            dimension_semantics=("parallel",)),
    )(x, prep["w1b"], prep["b1t"], prep["w2b"], prep["b2t"],
      prep["w3p"], prep["b3r"], prep["w4"], prep["b4r"])
    return out[:N]


# ---------------------------------------------------------------------------
# Pure-JAX reference (raw, untransformed params) for correctness.
# ---------------------------------------------------------------------------
def reference_forward(x_nchw, params):
    N = x_nchw.shape[0]
    h = jnp.transpose(x_nchw, (0, 2, 3, 1))
    h = lax.conv_general_dilated(
        h, params["w1"], (1, 1), [(1, 1), (1, 1)],
        dimension_numbers=("NHWC", "HWIO", "NHWC"))
    h = jnp.maximum(h + params["b1"], 0.0)
    h = lax.conv_general_dilated(
        h, params["w2"], (1, 1), [(1, 1), (1, 1)],
        dimension_numbers=("NHWC", "HWIO", "NHWC"))
    h = jnp.maximum(h + params["b2"], 0.0)
    h = jnp.transpose(h, (0, 3, 1, 2)).reshape(N, -1)         # torch NCHW flatten
    h = jnp.maximum(h @ params["w3"] + params["b3"], 0.0)
    return jnp.tanh(h @ params["w4"] + params["b4"])


# ---------------------------------------------------------------------------
# Deterministic parameter init (PyTorch default-style uniform bounds)
# ---------------------------------------------------------------------------
def init_params(key):
    ks = jax.random.split(key, 8)

    def _u(k, shape, fan_in):
        bound = 1.0 / jnp.sqrt(float(fan_in))
        return jax.random.uniform(
            k, shape, jnp.float32, minval=-bound, maxval=bound)

    F_in = C2 * H * W
    return {
        "w1": _u(ks[0], (K, K, C_IN, C1), C_IN * K * K),      # HWIO
        "b1": _u(ks[1], (C1,), C_IN * K * K),
        "w2": _u(ks[2], (K, K, C1, C2), C1 * K * K),
        "b2": _u(ks[3], (C2,), C1 * K * K),
        "w3": _u(ks[4], (F_in, F1), F_in),                    # rows in NCHW-flatten order
        "b3": _u(ks[5], (F1,), F_in),
        "w4": _u(ks[6], (F1, F2), F1),
        "b4": _u(ks[7], (F2,), F1),
    }


if __name__ == "__main__":
    key = jax.random.PRNGKey(0)
    k_x, k_p = jax.random.split(key)
    x = jax.random.normal(k_x, (2, 4, 16, 16), dtype=jnp.float32)  # NCHW input
    params = init_params(k_p)

    prepared = prepare_params(params)     # one-time weight re-layout (outside jit)
    fwd = jax.jit(body_builder_forward)

    out = jax.block_until_ready(fwd(x, prepared))
    assert out.shape == (2, 16), out.shape

    ref = jax.block_until_ready(reference_forward(x, params))
    assert jnp.allclose(out, ref, rtol=1e-4, atol=1e-4), (
        "Pallas output mismatch vs JAX reference")

    print("KERNEL_OK")
</pallas_src>

<mosaic_0001>
module attributes {stable_mosaic.version = 11 : i64} {
  func.func @_fused_torso_kernel(%arg0: i32, %arg1: memref<2x16x64xf32, #tpu.memory_space<vmem>>, %arg2: memref<192x128xf32, #tpu.memory_space<vmem>>, %arg3: memref<1x128xf32, #tpu.memory_space<vmem>>, %arg4: memref<384x128xf32, #tpu.memory_space<vmem>>, %arg5: memref<1x128xf32, #tpu.memory_space<vmem>>, %arg6: memref<2048x32xf32, #tpu.memory_space<vmem>>, %arg7: memref<1x32xf32, #tpu.memory_space<vmem>>, %arg8: memref<32x16xf32, #tpu.memory_space<vmem>>, %arg9: memref<1x16xf32, #tpu.memory_space<vmem>>, %arg10: memref<2x16xf32, #tpu.memory_space<vmem>>, %arg11: memref<2x18x64xf32, #tpu.memory_space<vmem>>, %arg12: memref<32x192xf32, #tpu.memory_space<vmem>>, %arg13: memref<2x18x128xf32, #tpu.memory_space<vmem>>, %arg14: memref<32x384xf32, #tpu.memory_space<vmem>>, %arg15: memref<2x2048xf32, #tpu.memory_space<vmem>>) attributes {dimension_semantics = [#tpu.dimension_semantics<parallel>], iteration_bounds = array<i64: 1>, scalar_prefetch = 0 : i64, scratch_operands = 5 : i64, tpu.core_type = #tpu.core_type<tc>, window_params = [{transform_indices = @transform_0, window_bounds = array<i64: 2, 16, 64>}, {pipeline_mode = #tpu.pipeline_mode<synchronous>, transform_indices = @transform_1, window_bounds = array<i64: 192, 128>}, {pipeline_mode = #tpu.pipeline_mode<synchronous>, transform_indices = @transform_2, window_bounds = array<i64: 1, 128>}, {pipeline_mode = #tpu.pipeline_mode<synchronous>, transform_indices = @transform_3, window_bounds = array<i64: 384, 128>}, {pipeline_mode = #tpu.pipeline_mode<synchronous>, transform_indices = @transform_4, window_bounds = array<i64: 1, 128>}, {pipeline_mode = #tpu.pipeline_mode<synchronous>, transform_indices = @transform_5, window_bounds = array<i64: 2048, 32>}, {pipeline_mode = #tpu.pipeline_mode<synchronous>, transform_indices = @transform_6, window_bounds = array<i64: 1, 32>}, {pipeline_mode = #tpu.pipeline_mode<synchronous>, transform_indices = @transform_7, window_bounds = array<i64: 32, 16>}, {pipeline_mode = #tpu.pipeline_mode<synchronous>, transform_indices = @transform_8, window_bounds = array<i64: 1, 16>}, {transform_indices = @transform_9, window_bounds = array<i64: 2, 16>}]} {
    %cst = arith.constant 0.000000e+00 : f32
    %0 = vector.broadcast %cst : f32 to vector<2x1x64xf32>
    %c0 = arith.constant 0 : index
    %c0_0 = arith.constant 0 : index
    %c0_1 = arith.constant 0 : index
    %1 = vector.load %arg11[%c0, %c0_0, %c0_1] : memref<2x18x64xf32, #tpu.memory_space<vmem>>, vector<2x1x64xf32>
    tpu.vector_store %arg11[%c0, %c0_0, %c0_1], %0 {strides = array<i32>} : memref<2x18x64xf32, #tpu.memory_space<vmem>>, vector<2x1x64xf32>,
    %cst_2 = arith.constant 0.000000e+00 : f32
    %2 = vector.broadcast %cst_2 : f32 to vector<2x1x64xf32>
    %c0_3 = arith.constant 0 : index
    %c17 = arith.constant 17 : index
    %c0_4 = arith.constant 0 : index
    %3 = vector.load %arg11[%c0_3, %c17, %c0_4] : memref<2x18x64xf32, #tpu.memory_space<vmem>>, vector<2x1x64xf32>
    tpu.vector_store %arg11[%c0_3, %c17, %c0_4], %2 {strides = array<i32>} : memref<2x18x64xf32, #tpu.memory_space<vmem>>, vector<2x1x64xf32>,
    %c0_5 = arith.constant 0 : index
    %c0_6 = arith.constant 0 : index
    %c0_7 = arith.constant 0 : index
    %4 = vector.load %arg1[%c0_5, %c0_6, %c0_7] : memref<2x16x64xf32, #tpu.memory_space<vmem>>, vector<2x16x64xf32>
    %c0_8 = arith.constant 0 : index
    %c1 = arith.constant 1 : index
    %c0_9 = arith.constant 0 : index
    %5 = vector.load %arg11[%c0_8, %c1, %c0_9] : memref<2x18x64xf32, #tpu.memory_space<vmem>>, vector<2x16x64xf32>
    tpu.vector_store %arg11[%c0_8, %c1, %c0_9], %4 {strides = array<i32>} : memref<2x18x64xf32, #tpu.memory_space<vmem>>, vector<2x16x64xf32>,
    %c0_10 = arith.constant 0 : index
    %c0_11 = arith.constant 0 : index
    %c0_12 = arith.constant 0 : index
    %6 = vector.load %arg11[%c0_10, %c0_11, %c0_12] : memref<2x18x64xf32, #tpu.memory_space<vmem>>, vector<2x16x64xf32>
    %7 = vector.shape_cast %6 : vector<2x16x64xf32> to vector<32x64xf32>
    %c0_13 = arith.constant 0 : index
    %c0_14 = arith.constant 0 : index
    %8 = vector.load %arg12[%c0_13, %c0_14] : memref<32x192xf32, #tpu.memory_space<vmem>>, vector<32x64xf32>
    tpu.vector_store %arg12[%c0_13, %c0_14], %7 {strides = array<i32>} : memref<32x192xf32, #tpu.memory_space<vmem>>, vector<32x64xf32>,
    %c0_15 = arith.constant 0 : index
    %c1_16 = arith.constant 1 : index
    %c0_17 = arith.constant 0 : index
    %9 = vector.load %arg11[%c0_15, %c1_16, %c0_17] : memref<2x18x64xf32, #tpu.memory_space<vmem>>, vector<2x16x64xf32>
    %10 = vector.shape_cast %9 : vector<2x16x64xf32> to vector<32x64xf32>
    %c0_18 = arith.constant 0 : index
    %c64 = arith.constant 64 : index
    %11 = vector.load %arg12[%c0_18, %c64] : memref<32x192xf32, #tpu.memory_space<vmem>>, vector<32x64xf32>
    tpu.vector_store %arg12[%c0_18, %c64], %10 {strides = array<i32>} : memref<32x192xf32, #tpu.memory_space<vmem>>, vector<32x64xf32>,
    %c0_19 = arith.constant 0 : index
    %c2 = arith.constant 2 : index
    %c0_20 = arith.constant 0 : index
    %12 = vector.load %arg11[%c0_19, %c2, %c0_20] : memref<2x18x64xf32, #tpu.memory_space<vmem>>, vector<2x16x64xf32>
    %13 = vector.shape_cast %12 : vector<2x16x64xf32> to vector<32x64xf32>
    %c0_21 = arith.constant 0 : index
    %c128 = arith.constant 128 : index
    %14 = vector.load %arg12[%c0_21, %c128] : memref<32x192xf32, #tpu.memory_space<vmem>>, vector<32x64xf32>
    tpu.vector_store %arg12[%c0_21, %c128], %13 {strides = array<i32>} : memref<32x192xf32, #tpu.memory_space<vmem>>, vector<32x64xf32>,
    %c0_22 = arith.constant 0 : index
    %c0_23 = arith.constant 0 : index
    %15 = vector.load %arg12[%c0_22, %c0_23] : memref<32x192xf32, #tpu.memory_space<vmem>>, vector<32x192xf32>
    %c0_24 = arith.constant 0 : index
    %c0_25 = arith.constant 0 : index
    %16 = vector.load %arg2[%c0_24, %c0_25] : memref<192x128xf32, #tpu.memory_space<vmem>>, vector<192x128xf32>
    %cst_26 = arith.constant dense<0.000000e+00> : vector<32x128xf32>
    %17 = tpu.matmul %15, %16, %cst_26 {dimension_numbers = #tpu.dot_dimension_numbers<[1], [0], [0], [1], [0, 0, 1, 1], [], []>} : vector<32x192xf32>, vector<192x128xf32>, vector<32x128xf32> -> vector<32x128xf32>
    %c0_27 = arith.constant 0 : index
    %c0_28 = arith.constant 0 : index
    %18 = vector.load %arg3[%c0_27, %c0_28] : memref<1x128xf32, #tpu.memory_space<vmem>>, vector<1x128xf32>
    %19 = vector.broadcast %18 : vector<1x128xf32> to vector<32x128xf32>
    %20 = arith.addf %17, %19 : vector<32x128xf32>
    %cst_29 = arith.constant 0.000000e+00 : f32
    %21 = vector.broadcast %cst_29 : f32 to vector<32x128xf32>
    %22 = arith.maximumf %20, %21 : vector<32x128xf32>
    %cst_30 = arith.constant 0.000000e+00 : f32
    %23 = vector.broadcast %cst_30 : f32 to vector<2x1x128xf32>
    %c0_31 = arith.constant 0 : index
    %c0_32 = arith.constant 0 : index
    %c0_33 = arith.constant 0 : index
    %24 = vector.load %arg13[%c0_31, %c0_32, %c0_33] : memref<2x18x128xf32, #tpu.memory_space<vmem>>, vector<2x1x128xf32>
    tpu.vector_store %arg13[%c0_31, %c0_32, %c0_33], %23 {strides = array<i32>} : memref<2x18x128xf32, #tpu.memory_space<vmem>>, vector<2x1x128xf32>,
    %cst_34 = arith.constant 0.000000e+00 : f32
    %25 = vector.broadcast %cst_34 : f32 to vector<2x1x128xf32>
    %c0_35 = arith.constant 0 : index
    %c17_36 = arith.constant 17 : index
    %c0_37 = arith.constant 0 : index
    %26 = vector.load %arg13[%c0_35, %c17_36, %c0_37] : memref<2x18x128xf32, #tpu.memory_space<vmem>>, vector<2x1x128xf32>
    tpu.vector_store %arg13[%c0_35, %c17_36, %c0_37], %25 {strides = array<i32>} : memref<2x18x128xf32, #tpu.memory_space<vmem>>, vector<2x1x128xf32>,
    %27 = vector.shape_cast %22 : vector<32x128xf32> to vector<2x16x128xf32>
    %c0_38 = arith.constant 0 : index
    %c1_39 = arith.constant 1 : index
    %c0_40 = arith.constant 0 : index
    %28 = vector.load %arg13[%c0_38, %c1_39, %c0_40] : memref<2x18x128xf32, #tpu.memory_space<vmem>>, vector<2x16x128xf32>
    tpu.vector_store %arg13[%c0_38, %c1_39, %c0_40], %27 {strides = array<i32>} : memref<2x18x128xf32, #tpu.memory_space<vmem>>, vector<2x16x128xf32>,
    %c0_41 = arith.constant 0 : index
    %c0_42 = arith.constant 0 : index
    %c0_43 = arith.constant 0 : index
    %29 = vector.load %arg13[%c0_41, %c0_42, %c0_43] : memref<2x18x128xf32, #tpu.memory_space<vmem>>, vector<2x16x128xf32>
    %30 = vector.shape_cast %29 : vector<2x16x128xf32> to vector<32x128xf32>
    %c0_44 = arith.constant 0 : index
    %c0_45 = arith.constant 0 : index
    %31 = vector.load %arg14[%c0_44, %c0_45] : memref<32x384xf32, #tpu.memory_space<vmem>>, vector<32x128xf32>
    tpu.vector_store %arg14[%c0_44, %c0_45], %30 {strides = array<i32>} : memref<32x384xf32, #tpu.memory_space<vmem>>, vector<32x128xf32>,
    %c0_46 = arith.constant 0 : index
    %c1_47 = arith.constant 1 : index
    %c0_48 = arith.constant 0 : index
    %32 = vector.load %arg13[%c0_46, %c1_47, %c0_48] : memref<2x18x128xf32, #tpu.memory_space<vmem>>, vector<2x16x128xf32>
    %33 = vector.shape_cast %32 : vector<2x16x128xf32> to vector<32x128xf32>
    %c0_49 = arith.constant 0 : index
    %c128_50 = arith.constant 128 : index
    %34 = vector.load %arg14[%c0_49, %c128_50] : memref<32x384xf32, #tpu.memory_space<vmem>>, vector<32x128xf32>
    tpu.vector_store %arg14[%c0_49, %c128_50], %33 {strides = array<i32>} : memref<32x384xf32, #tpu.memory_space<vmem>>, vector<32x128xf32>,
    %c0_51 = arith.constant 0 : index
    %c2_52 = arith.constant 2 : index
    %c0_53 = arith.constant 0 : index
    %35 = vector.load %arg13[%c0_51, %c2_52, %c0_53] : memref<2x18x128xf32, #tpu.memory_space<vmem>>, vector<2x16x128xf32>
    %36 = vector.shape_cast %35 : vector<2x16x128xf32> to vector<32x128xf32>
    %c0_54 = arith.constant 0 : index
    %c256 = arith.constant 256 : index
    %37 = vector.load %arg14[%c0_54, %c256] : memref<32x384xf32, #tpu.memory_space<vmem>>, vector<32x128xf32>
    tpu.vector_store %arg14[%c0_54, %c256], %36 {strides = array<i32>} : memref<32x384xf32, #tpu.memory_space<vmem>>, vector<32x128xf32>,
    %c0_55 = arith.constant 0 : index
    %c0_56 = arith.constant 0 : index
    %38 = vector.load %arg14[%c0_55, %c0_56] : memref<32x384xf32, #tpu.memory_space<vmem>>, vector<32x384xf32>
    %c0_57 = arith.constant 0 : index
    %c0_58 = arith.constant 0 : index
    %39 = vector.load %arg4[%c0_57, %c0_58] : memref<384x128xf32, #tpu.memory_space<vmem>>, vector<384x128xf32>
    %cst_59 = arith.constant dense<0.000000e+00> : vector<32x128xf32>
    %40 = tpu.matmul %38, %39, %cst_59 {dimension_numbers = #tpu.dot_dimension_numbers<[1], [0], [0], [1], [0, 0, 1, 1], [], []>} : vector<32x384xf32>, vector<384x128xf32>, vector<32x128xf32> -> vector<32x128xf32>
    %c0_60 = arith.constant 0 : index
    %c0_61 = arith.constant 0 : index
    %41 = vector.load %arg5[%c0_60, %c0_61] : memref<1x128xf32, #tpu.memory_space<vmem>>, vector<1x128xf32>
    %42 = vector.broadcast %41 : vector<1x128xf32> to vector<32x128xf32>
    %43 = arith.addf %40, %42 : vector<32x128xf32>
    %cst_62 = arith.constant 0.000000e+00 : f32
    %44 = vector.broadcast %cst_62 : f32 to vector<32x128xf32>
    %45 = arith.maximumf %43, %44 : vector<32x128xf32>
    %46 = vector.shape_cast %45 : vector<32x128xf32> to vector<2x16x128xf32>
    %47 = vector.extract_strided_slice %46 {offsets = [0, 0, 0], sizes = [2, 1, 128], strides = [1, 1, 1]} : vector<2x16x128xf32> to vector<2x1x128xf32>
    %48 = vector.shape_cast %47 : vector<2x1x128xf32> to vector<2x128xf32>
    %c0_63 = arith.constant 0 : index
    %c0_64 = arith.constant 0 : index
    %49 = vector.load %arg15[%c0_63, %c0_64] : memref<2x2048xf32, #tpu.memory_space<vmem>>, vector<2x128xf32>
    tpu.vector_store %arg15[%c0_63, %c0_64], %48 {strides = array<i32>} : memref<2x2048xf32, #tpu.memory_space<vmem>>, vector<2x128xf32>,
    %50 = vector.extract_strided_slice %46 {offsets = [0, 1, 0], sizes = [2, 1, 128], strides = [1, 1, 1]} : vector<2x16x128xf32> to vector<2x1x128xf32>
    %51 = vector.shape_cast %50 : vector<2x1x128xf32> to vector<2x128xf32>
    %c0_65 = arith.constant 0 : index
    %c128_66 = arith.constant 128 : index
    %52 = vector.load %arg15[%c0_65, %c128_66] : memref<2x2048xf32, #tpu.memory_space<vmem>>, vector<2x128xf32>
    tpu.vector_store %arg15[%c0_65, %c128_66], %51 {strides = array<i32>} : memref<2x2048xf32, #tpu.memory_space<vmem>>, vector<2x128xf32>,
    %53 = vector.extract_strided_slice %46 {offsets = [0, 2, 0], sizes = [2, 1, 128], strides = [1, 1, 1]} : vector<2x16x128xf32> to vector<2x1x128xf32>
    %54 = vector.shape_cast %53 : vector<2x1x128xf32> to vector<2x128xf32>
    %c0_67 = arith.constant 0 : index
    %c256_68 = arith.constant 256 : index
    %55 = vector.load %arg15[%c0_67, %c256_68] : memref<2x2048xf32, #tpu.memory_space<vmem>>, vector<2x128xf32>
    tpu.vector_store %arg15[%c0_67, %c256_68], %54 {strides = array<i32>} : memref<2x2048xf32, #tpu.memory_space<vmem>>, vector<2x128xf32>,
    %56 = vector.extract_strided_slice %46 {offsets = [0, 3, 0], sizes = [2, 1, 128], strides = [1, 1, 1]} : vector<2x16x128xf32> to vector<2x1x128xf32>
    %57 = vector.shape_cast %56 : vector<2x1x128xf32> to vector<2x128xf32>
    %c0_69 = arith.constant 0 : index
    %c384 = arith.constant 384 : index
    %58 = vector.load %arg15[%c0_69, %c384] : memref<2x2048xf32, #tpu.memory_space<vmem>>, vector<2x128xf32>
    tpu.vector_store %arg15[%c0_69, %c384], %57 {strides = array<i32>} : memref<2x2048xf32, #tpu.memory_space<vmem>>, vector<2x128xf32>,
    %59 = vector.extract_strided_slice %46 {offsets = [0, 4, 0], sizes = [2, 1, 128], strides = [1, 1, 1]} : vector<2x16x128xf32> to vector<2x1x128xf32>
    %60 = vector.shape_cast %59 : vector<2x1x128xf32> to vector<2x128xf32>
    %c0_70 = arith.constant 0 : index
    %c512 = arith.constant 512 : index
    %61 = vector.load %arg15[%c0_70, %c512] : memref<2x2048xf32, #tpu.memory_space<vmem>>, vector<2x128xf32>
    tpu.vector_store %arg15[%c0_70, %c512], %60 {strides = array<i32>} : memref<2x2048xf32, #tpu.memory_space<vmem>>, vector<2x128xf32>,
    %62 = vector.extract_strided_slice %46 {offsets = [0, 5, 0], sizes = [2, 1, 128], strides = [1, 1, 1]} : vector<2x16x128xf32> to vector<2x1x128xf32>
    %63 = vector.shape_cast %62 : vector<2x1x128xf32> to vector<2x128xf32>
    %c0_71 = arith.constant 0 : index
    %c640 = arith.constant 640 : index
    %64 = vector.load %arg15[%c0_71, %c640] : memref<2x2048xf32, #tpu.memory_space<vmem>>, vector<2x128xf32>
    tpu.vector_store %arg15[%c0_71, %c640], %63 {strides = array<i32>} : memref<2x2048xf32, #tpu.memory_space<vmem>>, vector<2x128xf32>,
    %65 = vector.extract_strided_slice %46 {offsets = [0, 6, 0], sizes = [2, 1, 128], strides = [1, 1, 1]} : vector<2x16x128xf32> to vector<2x1x128xf32>
    %66 = vector.shape_cast %65 : vector<2x1x128xf32> to vector<2x128xf32>
    %c0_72 = arith.constant 0 : index
    %c768 = arith.constant 768 : index
    %67 = vector.load %arg15[%c0_72, %c768] : memref<2x2048xf32, #tpu.memory_space<vmem>>, vector<2x128xf32>
    tpu.vector_store %arg15[%c0_72, %c768], %66 {strides = array<i32>} : memref<2x2048xf32, #tpu.memory_space<vmem>>, vector<2x128xf32>,
    %68 = vector.extract_strided_slice %46 {offsets = [0, 7, 0], sizes = [2, 1, 128], strides = [1, 1, 1]} : vector<2x16x128xf32> to vector<2x1x128xf32>
    %69 = vector.shape_cast %68 : vector<2x1x128xf32> to vector<2x128xf32>
    %c0_73 = arith.constant 0 : index
    %c896 = arith.constant 896 : index
    %70 = vector.load %arg15[%c0_73, %c896] : memref<2x2048xf32, #tpu.memory_space<vmem>>, vector<2x128xf32>
    tpu.vector_store %arg15[%c0_73, %c896], %69 {strides = array<i32>} : memref<2x2048xf32, #tpu.memory_space<vmem>>, vector<2x128xf32>,
    %71 = vector.extract_strided_slice %46 {offsets = [0, 8, 0], sizes = [2, 1, 128], strides = [1, 1, 1]} : vector<2x16x128xf32> to vector<2x1x128xf32>
    %72 = vector.shape_cast %71 : vector<2x1x128xf32> to vector<2x128xf32>
    %c0_74 = arith.constant 0 : index
    %c1024 = arith.constant 1024 : index
    %73 = vector.load %arg15[%c0_74, %c1024] : memref<2x2048xf32, #tpu.memory_space<vmem>>, vector<2x128xf32>
    tpu.vector_store %arg15[%c0_74, %c1024], %72 {strides = array<i32>} : memref<2x2048xf32, #tpu.memory_space<vmem>>, vector<2x128xf32>,
    %74 = vector.extract_strided_slice %46 {offsets = [0, 9, 0], sizes = [2, 1, 128], strides = [1, 1, 1]} : vector<2x16x128xf32> to vector<2x1x128xf32>
    %75 = vector.shape_cast %74 : vector<2x1x128xf32> to vector<2x128xf32>
    %c0_75 = arith.constant 0 : index
    %c1152 = arith.constant 1152 : index
    %76 = vector.load %arg15[%c0_75, %c1152] : memref<2x2048xf32, #tpu.memory_space<vmem>>, vector<2x128xf32>
    tpu.vector_store %arg15[%c0_75, %c1152], %75 {strides = array<i32>} : memref<2x2048xf32, #tpu.memory_space<vmem>>, vector<2x128xf32>,
    %77 = vector.extract_strided_slice %46 {offsets = [0, 10, 0], sizes = [2, 1, 128], strides = [1, 1, 1]} : vector<2x16x128xf32> to vector<2x1x128xf32>
    %78 = vector.shape_cast %77 : vector<2x1x128xf32> to vector<2x128xf32>
    %c0_76 = arith.constant 0 : index
    %c1280 = arith.constant 1280 : index
    %79 = vector.load %arg15[%c0_76, %c1280] : memref<2x2048xf32, #tpu.memory_space<vmem>>, vector<2x128xf32>
    tpu.vector_store %arg15[%c0_76, %c1280], %78 {strides = array<i32>} : memref<2x2048xf32, #tpu.memory_space<vmem>>, vector<2x128xf32>,
    %80 = vector.extract_strided_slice %46 {offsets = [0, 11, 0], sizes = [2, 1, 128], strides = [1, 1, 1]} : vector<2x16x128xf32> to vector<2x1x128xf32>
    %81 = vector.shape_cast %80 : vector<2x1x128xf32> to vector<2x128xf32>
    %c0_77 = arith.constant 0 : index
    %c1408 = arith.constant 1408 : index
    %82 = vector.load %arg15[%c0_77, %c1408] : memref<2x2048xf32, #tpu.memory_space<vmem>>, vector<2x128xf32>
    tpu.vector_store %arg15[%c0_77, %c1408], %81 {strides = array<i32>} : memref<2x2048xf32, #tpu.memory_space<vmem>>, vector<2x128xf32>,
    %83 = vector.extract_strided_slice %46 {offsets = [0, 12, 0], sizes = [2, 1, 128], strides = [1, 1, 1]} : vector<2x16x128xf32> to vector<2x1x128xf32>
    %84 = vector.shape_cast %83 : vector<2x1x128xf32> to vector<2x128xf32>
    %c0_78 = arith.constant 0 : index
    %c1536 = arith.constant 1536 : index
    %85 = vector.load %arg15[%c0_78, %c1536] : memref<2x2048xf32, #tpu.memory_space<vmem>>, vector<2x128xf32>
    tpu.vector_store %arg15[%c0_78, %c1536], %84 {strides = array<i32>} : memref<2x2048xf32, #tpu.memory_space<vmem>>, vector<2x128xf32>,
    %86 = vector.extract_strided_slice %46 {offsets = [0, 13, 0], sizes = [2, 1, 128], strides = [1, 1, 1]} : vector<2x16x128xf32> to vector<2x1x128xf32>
    %87 = vector.shape_cast %86 : vector<2x1x128xf32> to vector<2x128xf32>
    %c0_79 = arith.constant 0 : index
    %c1664 = arith.constant 1664 : index
    %88 = vector.load %arg15[%c0_79, %c1664] : memref<2x2048xf32, #tpu.memory_space<vmem>>, vector<2x128xf32>
    tpu.vector_store %arg15[%c0_79, %c1664], %87 {strides = array<i32>} : memref<2x2048xf32, #tpu.memory_space<vmem>>, vector<2x128xf32>,
    %89 = vector.extract_strided_slice %46 {offsets = [0, 14, 0], sizes = [2, 1, 128], strides = [1, 1, 1]} : vector<2x16x128xf32> to vector<2x1x128xf32>
    %90 = vector.shape_cast %89 : vector<2x1x128xf32> to vector<2x128xf32>
    %c0_80 = arith.constant 0 : index
    %c1792 = arith.constant 1792 : index
    %91 = vector.load %arg15[%c0_80, %c1792] : memref<2x2048xf32, #tpu.memory_space<vmem>>, vector<2x128xf32>
    tpu.vector_store %arg15[%c0_80, %c1792], %90 {strides = array<i32>} : memref<2x2048xf32, #tpu.memory_space<vmem>>, vector<2x128xf32>,
    %92 = vector.extract_strided_slice %46 {offsets = [0, 15, 0], sizes = [2, 1, 128], strides = [1, 1, 1]} : vector<2x16x128xf32> to vector<2x1x128xf32>
    %93 = vector.shape_cast %92 : vector<2x1x128xf32> to vector<2x128xf32>
    %c0_81 = arith.constant 0 : index
    %c1920 = arith.constant 1920 : index
    %94 = vector.load %arg15[%c0_81, %c1920] : memref<2x2048xf32, #tpu.memory_space<vmem>>, vector<2x128xf32>
    tpu.vector_store %arg15[%c0_81, %c1920], %93 {strides = array<i32>} : memref<2x2048xf32, #tpu.memory_space<vmem>>, vector<2x128xf32>,
    %c0_82 = arith.constant 0 : index
    %c0_83 = arith.constant 0 : index
    %95 = vector.load %arg15[%c0_82, %c0_83] : memref<2x2048xf32, #tpu.memory_space<vmem>>, vector<2x2048xf32>
    %c0_84 = arith.constant 0 : index
    %c0_85 = arith.constant 0 : index
    %96 = vector.load %arg6[%c0_84, %c0_85] : memref<2048x32xf32, #tpu.memory_space<vmem>>, vector<2048x32xf32>
    %cst_86 = arith.constant dense<0.000000e+00> : vector<2x32xf32>
    %97 = tpu.matmul %95, %96, %cst_86 {dimension_numbers = #tpu.dot_dimension_numbers<[1], [0], [0], [1], [0, 0, 1, 1], [], []>} : vector<2x2048xf32>, vector<2048x32xf32>, vector<2x32xf32> -> vector<2x32xf32>
    %c0_87 = arith.constant 0 : index
    %c0_88 = arith.constant 0 : index
    %98 = vector.load %arg7[%c0_87, %c0_88] : memref<1x32xf32, #tpu.memory_space<vmem>>, vector<1x32xf32>
    %99 = vector.broadcast %98 : vector<1x32xf32> to vector<2x32xf32>
    %100 = arith.addf %97, %99 : vector<2x32xf32>
    %cst_89 = arith.constant 0.000000e+00 : f32
    %101 = vector.broadcast %cst_89 : f32 to vector<2x32xf32>
    %102 = arith.maximumf %100, %101 : vector<2x32xf32>
    %c0_90 = arith.constant 0 : index
    %c0_91 = arith.constant 0 : index
    %103 = vector.load %arg8[%c0_90, %c0_91] : memref<32x16xf32, #tpu.memory_space<vmem>>, vector<32x16xf32>
    %cst_92 = arith.constant dense<0.000000e+00> : vector<2x16xf32>
    %104 = tpu.matmul %102, %103, %cst_92 {dimension_numbers = #tpu.dot_dimension_numbers<[1], [0], [0], [1], [0, 0, 1, 1], [], []>} : vector<2x32xf32>, vector<32x16xf32>, vector<2x16xf32> -> vector<2x16xf32>
    %c0_93 = arith.constant 0 : index
    %c0_94 = arith.constant 0 : index
    %105 = vector.load %arg9[%c0_93, %c0_94] : memref<1x16xf32, #tpu.memory_space<vmem>>, vector<1x16xf32>
    %106 = vector.broadcast %105 : vector<1x16xf32> to vector<2x16xf32>
    %107 = arith.addf %104, %106 : vector<2x16xf32>
    %108 = math.tanh %107 : vector<2x16xf32>
    %c0_95 = arith.constant 0 : index
    %c0_96 = arith.constant 0 : index
    %109 = vector.load %arg10[%c0_95, %c0_96] : memref<2x16xf32, #tpu.memory_space<vmem>>, vector<2x16xf32>
    tpu.vector_store %arg10[%c0_95, %c0_96], %108 {strides = array<i32>} : memref<2x16xf32, #tpu.memory_space<vmem>>, vector<2x16xf32>,
    return
  }
  func.func @transform_0(%arg0: i32) -> (i32, i32, i32) {
    %c0_i32 = arith.constant 0 : i32
    %c0_i32_0 = arith.constant 0 : i32
    %c0_i32_1 = arith.constant 0 : i32
    return %arg0, %c0_i32, %c0_i32_0 : i32, i32, i32
  }
  func.func @transform_1(%arg0: i32) -> (i32, i32) {
    %c0_i32 = arith.constant 0 : i32
    %c0_i32_0 = arith.constant 0 : i32
    %c0_i32_1 = arith.constant 0 : i32
    return %c0_i32, %c0_i32_0 : i32, i32
  }
  func.func @transform_2(%arg0: i32) -> (i32, i32) {
    %c0_i32 = arith.constant 0 : i32
    %c0_i32_0 = arith.constant 0 : i32
    %c0_i32_1 = arith.constant 0 : i32
    return %c0_i32, %c0_i32_0 : i32, i32
  }
  func.func @transform_3(%arg0: i32) -> (i32, i32) {
    %c0_i32 = arith.constant 0 : i32
    %c0_i32_0 = arith.constant 0 : i32
    %c0_i32_1 = arith.constant 0 : i32
    return %c0_i32, %c0_i32_0 : i32, i32
  }
  func.func @transform_4(%arg0: i32) -> (i32, i32) {
    %c0_i32 = arith.constant 0 : i32
    %c0_i32_0 = arith.constant 0 : i32
    %c0_i32_1 = arith.constant 0 : i32
    return %c0_i32, %c0_i32_0 : i32, i32
  }
  func.func @transform_5(%arg0: i32) -> (i32, i32) {
    %c0_i32 = arith.constant 0 : i32
    %c0_i32_0 = arith.constant 0 : i32
    %c0_i32_1 = arith.constant 0 : i32
    return %c0_i32, %c0_i32_0 : i32, i32
  }
  func.func @transform_6(%arg0: i32) -> (i32, i32) {
    %c0_i32 = arith.constant 0 : i32
    %c0_i32_0 = arith.constant 0 : i32
    %c0_i32_1 = arith.constant 0 : i32
    return %c0_i32, %c0_i32_0 : i32, i32
  }
  func.func @transform_7(%arg0: i32) -> (i32, i32) {
    %c0_i32 = arith.constant 0 : i32
    %c0_i32_0 = arith.constant 0 : i32
    %c0_i32_1 = arith.constant 0 : i32
    return %c0_i32, %c0_i32_0 : i32, i32
  }
  func.func @transform_8(%arg0: i32) -> (i32, i32) {
    %c0_i32 = arith.constant 0 : i32
    %c0_i32_0 = arith.constant 0 : i32
    %c0_i32_1 = arith.constant 0 : i32
    return %c0_i32, %c0_i32_0 : i32, i32
  }
  func.func @transform_9(%arg0: i32) -> (i32, i32) {
    %c0_i32 = arith.constant 0 : i32
    %c0_i32_0 = arith.constant 0 : i32
    return %arg0, %c0_i32 : i32, i32
  }
}

</mosaic_0001>

<bundles_post_ra>
// kernel: body_builder_forward.1
= control target key start
LH: loop header
LB: loop body
LE: loop exit
PB: predicated region body
PF: predicated region fallthrough
CT: control target
= control target key end

     0   :  { %vm42_vm0 = vcmask 523264   ;;  %v2181_v4 = vmov 0.0   ;;  %vm33_vm1 = vcmask 516096   ;;  %s2182_s26 = smov 64   ;;  %s3447_s0 = inlined_call_operand.vmem [shape: f32[2,16,64], index: 0, kind: input, shape index: {}]   ;;  %s3448_s1 = inlined_call_operand.vmem [shape: f32[192,128], index: 1, kind: input, shape index: {}]   ;;  %s3449_s2 = inlined_call_operand.vmem [shape: f32[1,128], index: 2, kind: input, shape index: {}]   ;;  %s3450_s3 = inlined_call_operand.vmem [shape: f32[384,128], index: 3, kind: input, shape index: {}]   ;;  %s3451_s4 = inlined_call_operand.vmem [shape: f32[1,128], index: 4, kind: input, shape index: {}]   ;;  %s3452_s5 = inlined_call_operand.vmem [shape: f32[2048,32], index: 5, kind: input, shape index: {}]   ;;  %s3453_s6 = inlined_call_operand.vmem [shape: f32[1,32], index: 6, kind: input, shape index: {}]   ;;  %s3454_s7 = inlined_call_operand.vmem [shape: f32[32,16], index: 7, kind: input, shape index: {}]   ;;  %s3455_s8 = inlined_call_operand.vmem [shape: f32[1,16], index: 8, kind: input, shape index: {}]   ;;  %s3456_s9 = inlined_call_operand.hbm [shape: f32[2,16], index: 9, kind: output, shape index: {}]  }
   0x1   :  { %v38_v0 = vld [vmem:[%s3447_s0] sm:$0xff]  ;;  %v39_v1 = vld [vmem:[%s3447_s0 + $0x8] sm:$0xff]  ;;  %v40_v2 = vld [vmem:[%s3447_s0 + $0x10] sm:$0xff]  ;;  %139 = vmatprep.subr.mxu0 %v2181_v4  ;;  %228 = vst [vmem:[#allocation4] sm:$0x1] %v2181_v4 }
   0x2   :  { %43 = vst.msk [vmem:[#allocation2 + $0x1] sm:$0xff] %vm42_vm0, %v38_v0  ;;  %44 = vst.msk [vmem:[#allocation2 + $0x9] sm:$0xff] %vm42_vm0, %v39_v1  ;;  %v41_v3 = vld [vmem:[%s3447_s0 + $0x18] sm:$0xff]  ;;  %v110_v6 = vld [vmem:[%s3448_s1 + $0x70] sm:$0xff] }
   0x3   :  { %45 = vst.msk [vmem:[#allocation2 + $0x19] sm:$0xff] %vm42_vm0, %v40_v2  ;;  %229 = vst [vmem:[#allocation4 + $0x18] sm:$0x1] %v2181_v4  ;;  %v111_v5 = vld [vmem:[%s3448_s1 + $0x78] sm:$0xff]  ;;  %v109_v7 = vld [vmem:[%s3448_s1 + $0x68] sm:$0xff] }
   0x4   :  { %230 = vst [vmem:[#allocation4 + $0x11] sm:$0x1] %v2181_v4  ;;  %231 = vst [vmem:[#allocation4 + $0x29] sm:$0x1] %v2181_v4  ;;  %140 = vmatpush1.msra.mxu0 %v111_v5  ;;  %v108_v8 = vld [vmem:[%s3448_s1 + $0x60] sm:$0xff]  ;;  %v107_v11 = vld [vmem:[%s3448_s1 + $0x58] sm:$0xff] }
   0x5   :  { %46 = vst.msk [vmem:[#allocation2 + $0x21] sm:$0xff] %vm42_vm0, %v41_v3  ;;  %141 = vmatprep.subr.mxu0 %v2181_v4  ;;  %v106_v16 = vld [vmem:[%s3448_s1 + $0x50] sm:$0xff]  ;;  %v105_v22 = vld [vmem:[%s3448_s1 + $0x48] sm:$0xff] }
   0x6   :  { %34 = vst.msk [vmem:[#allocation2] sm:$0x1] %vm33_vm1, %v2181_v4  ;;  %36 = vst.msk [vmem:[#allocation2 + $0x11] sm:$0x1] %vm33_vm1, %v2181_v4  ;;  %142 = vmatpush1.msra.mxu0 %v110_v6 }
   0x7   :  { %37 = vst.msk [vmem:[#allocation2 + $0x29] sm:$0x1] %vm33_vm1, %v2181_v4  ;;  %35 = vst.msk [vmem:[#allocation2 + $0x18] sm:$0x1] %vm33_vm1, %v2181_v4  ;;  %143 = vmatprep.subr.mxu0 %v2181_v4 }
   0x8   :  { %144 = vmatpush1.msra.mxu0 %v109_v7 }
   0x9   :  { %145 = vmatprep.subr.mxu0 %v2181_v4  ;;  %v55_v9 = vld [vmem:[#allocation2 + $0x1] sm:$0xff]  ;;  %v56_v13 = vld [vmem:[#allocation2 + $0x9] sm:$0xff] }
   0xa   :  { %v57_v10 = vld [vmem:[#allocation2 + $0x19] sm:$0xff]  ;;  %146 = vmatpush1.msra.mxu0 %v108_v8  ;;  %63 = vrot.lane.b32.xlu0 %v55_v9, %s2182_s26  ;;  %v48_v15 = vld [vmem:[#allocation2 + $0x8] sm:$0xff] }
   0xb   :  { %67 = vrot.lane.b32.xlu1 %v57_v10, %s2182_s26  ;;  %147 = vmatprep.subr.mxu0 %v2181_v4  ;;  %52 = vst.msk [vmem:[#allocation3 + $0x10] sm:$0xff] %vm42_vm0, %v48_v15  ;;  %v80_v18 = vld [vmem:[#allocation2 + $0x2] sm:$0xff] }
   0xc   :  { %v58_v14 = vld [vmem:[#allocation2 + $0x21] sm:$0xff]  ;;  %148 = vmatpush1.msra.mxu0 %v107_v11  ;;  %84 = vst.msk [vmem:[#allocation3 + $0x8] sm:$0xff] %vm42_vm0, %v80_v18 }
   0xd   :  { %v47_v12 = vld [vmem:[#allocation2] sm:$0xff]  ;;  %149 = vmatprep.subr.mxu0 %v2181_v4  ;;  %v81_v20 = vld [vmem:[#allocation2 + $0xa] sm:$0xff] }
   0xe   :  { %51 = vst.msk [vmem:[#allocation3] sm:$0xff] %vm42_vm0, %v47_v12  ;;  %v49_v17 = vld [vmem:[#allocation2 + $0x18] sm:$0xff]  ;;  %v50_v19 = vld [vmem:[#allocation2 + $0x20] sm:$0xff]  ;;  %65 = vrot.lane.b32.xlu0 %v56_v13, %s2182_s26  ;;  %85 = vst.msk [vmem:[#allocation3 + $0x18] sm:$0xff] %vm42_vm0, %v81_v20 }
   0xf   :  { %53 = vst.msk [vmem:[#allocation3 + $0x20] sm:$0xff] %vm42_vm0, %v49_v17  ;;  %v82_v21 = vld [vmem:[#allocation2 + $0x1a] sm:$0xff]  ;;  %69 = vrot.lane.b32.xlu1 %v58_v14, %s2182_s26  ;;  %54 = vst.msk [vmem:[#allocation3 + $0x30] sm:$0xff] %vm42_vm0, %v50_v19  ;;  %v83_v23 = vld [vmem:[#allocation2 + $0x22] sm:$0xff] }
  0x10   :  { %86 = vst.msk [vmem:[#allocation3 + $0x28] sm:$0xff] %vm42_vm0, %v82_v21 }
  0x11   :  { %14 = vsyncpa [#allocation8], 0  ;;  %150 = vmatpush1.msra.mxu0 %v106_v16  ;;  %87 = vst.msk [vmem:[#allocation3 + $0x38] sm:$0xff] %vm42_vm0, %v83_v23  ;;  %v104_v24 = vld [vmem:[%s3448_s1 + $0x40] sm:$0xff]  ;;  %v303_v25 = vld [vmem:[%s3450_s3 + $0xf8] sm:$0xff]  ;;  %vm75_vm2 = vcmask 1048064  }
  0x12   :  { %151 = vmatprep.subr.mxu0 %v2181_v4  ;;  %v287_v26 = vld [vmem:[%s3450_s3 + $0x78] sm:$0xff]  ;;  %v302_v27 = vld [vmem:[%s3450_s3 + $0xf0] sm:$0xff]  ;;  %1750 = vmatprep.subr.mxu1 %v303_v25  ;;  %v301_v32 = vld [vmem:[%s3450_s3 + $0xe8] sm:$0xff]  ;;  %vm522_vm3 = vcmask 1041409   ;;  %vm524_vm4 = vcmask 1043459   ;;  %vm526_vm5 = vcmask 1045509  }
  0x13   :  { %152 = vmatpush1.msra.mxu0 %v105_v22  ;;  %v103_v28 = vld [vmem:[%s3448_s1 + $0x38] sm:$0xff]  ;;  %1751 = vmatpush3.msra.mxu1 %v287_v26  ;;  %v286_v29 = vld [vmem:[%s3450_s3 + $0x70] sm:$0xff]  ;;  %v285_v33 = vld [vmem:[%s3450_s3 + $0x68] sm:$0xff]  ;;  %vm528_vm6 = vcmask 1047559   ;;  %vm2184_vm7 = vmmov 0   ;;  %vm1650_vm8 = vcmask 261120  }
  0x14   :  { %153 = vmatprep.subr.mxu0 %v2181_v4  ;;  %v102_v30 = vld [vmem:[%s3448_s1 + $0x30] sm:$0xff]  ;;  %v89_v31 = vld [vmem:[#allocation3 + $0x8] sm:$0xff]  ;;  %1752 = vmatprep.subr.mxu1 %v302_v27  ;;  %v101_v34 = vld [vmem:[%s3448_s1 + $0x28] sm:$0xff]  ;;  %s2185_s12 = smov [#allocation7]   ;;  %vm1725_vm9 = vcmask 123904  }
  0x15   :  { %154 = vmatpush1.msra.mxu0 %v104_v24  ;;  %1742 = vmatprep.mubr.msk.f32.mxu0 %vm42_vm0, %v89_v31  ;;  %v300_v35 = vld [vmem:[%s3450_s3 + $0xe0] sm:$0xff]  ;;  %v299_v38 = vld [vmem:[%s3450_s3 + $0xd8] sm:$0xff]  ;;  %v298_v41 = vld [vmem:[%s3450_s3 + $0xd0] sm:$0xff] }
  0x16   :  { %155 = vmatprep.subr.mxu0 %v2181_v4  ;;  %1753 = vmatpush3.msra.mxu1 %v286_v29  ;;  %v284_v36 = vld [vmem:[%s3450_s3 + $0x60] sm:$0xff]  ;;  %v283_v39 = vld [vmem:[%s3450_s3 + $0x58] sm:$0xff]  ;;  %v282_v42 = vld [vmem:[%s3450_s3 + $0x50] sm:$0xff] }
  0x17   :  { %156 = vmatpush1.msra.mxu0 %v103_v28  ;;  %1754 = vmatprep.subr.mxu1 %v301_v32  ;;  %v100_v37 = vld [vmem:[%s3448_s1 + $0x20] sm:$0xff]  ;;  %v99_v40 = vld [vmem:[%s3448_s1 + $0x18] sm:$0xff]  ;;  %v98_v43 = vld [vmem:[%s3448_s1 + $0x10] sm:$0xff] }
  0x18   :  { %157 = vmatprep.subr.mxu0 %v2181_v4  ;;  %1755 = vmatpush3.msra.mxu1 %v285_v33  ;;  %v297_v44 = vld [vmem:[%s3450_s3 + $0xc8] sm:$0xff]  ;;  %v296_v47 = vld [vmem:[%s3450_s3 + $0xc0] sm:$0xff]  ;;  %v295_v50 = vld [vmem:[%s3450_s3 + $0xb8] sm:$0xff] }
  0x19   :  { %158 = vmatpush1.msra.mxu0 %v102_v30  ;;  %1756 = vmatprep.subr.mxu1 %v300_v35  ;;  %v281_v45 = vld [vmem:[%s3450_s3 + $0x48] sm:$0xff]  ;;  %v280_v48 = vld [vmem:[%s3450_s3 + $0x40] sm:$0xff]  ;;  %v279_v51 = vld [vmem:[%s3450_s3 + $0x38] sm:$0xff] }
  0x1a   :  { %159 = vmatprep.subr.mxu0 %v2181_v4  ;;  %1757 = vmatpush3.msra.mxu1 %v284_v36  ;;  %v97_v46 = vld [vmem:[%s3448_s1 + $0x8] sm:$0xff]  ;;  %v96_v49 = vld [vmem:[%s3448_s1] sm:$0xff]  ;;  %v119_v52 = vld [vmem:[%s3448_s1 + $0xb8] sm:$0xff] }
  0x1b   :  { %160 = vmatpush1.msra.mxu0 %v101_v34  ;;  %1758 = vmatprep.subr.mxu1 %v299_v38  ;;  %v294_v53 = vld [vmem:[%s3450_s3 + $0xb0] sm:$0xff]  ;;  %v117_v55 = vld [vmem:[%s3448_s1 + $0xa8] sm:$0xff]  ;;  %v116_v56 = vld [vmem:[%s3448_s1 + $0xa0] sm:$0xff] }
  0x1c   :  { %161 = vmatprep.subr.mxu0 %v2181_v4  ;;  %1759 = vmatpush3.msra.mxu1 %v283_v39  ;;  %v118_v54 = vld [vmem:[%s3448_s1 + $0xb0] sm:$0xff]  ;;  %v115_v57 = vld [vmem:[%s3448_s1 + $0x98] sm:$0xff]  ;;  %v113_v59 = vld [vmem:[%s3448_s1 + $0x88] sm:$0xff] }
  0x1d   :  { %162 = vmatpush1.msra.mxu0 %v100_v37  ;;  %1760 = vmatprep.subr.mxu1 %v298_v41  ;;  %v114_v58 = vld [vmem:[%s3448_s1 + $0x90] sm:$0xff]  ;;  %v112_v60 = vld [vmem:[%s3448_s1 + $0x80] sm:$0xff]  ;;  %v91_v1 = vld [vmem:[#allocation3 + $0x18] sm:$0xff] }
  0x1e   :  { %163 = vmatprep.subr.mxu0 %v2181_v4  ;;  %1761 = vmatpush3.msra.mxu1 %v282_v42  ;;  %v93_v3 = vld [vmem:[#allocation3 + $0x28] sm:$0xff]  ;;  %v95_v7 = vld [vmem:[#allocation3 + $0x38] sm:$0xff]  ;;  %v278_v9 = vld [vmem:[%s3450_s3 + $0x30] sm:$0xff] }
  0x1f   :  { %164 = vmatpush1.msra.mxu0 %v99_v40  ;;  %1762 = vmatprep.subr.mxu1 %v297_v44  ;;  %v293_v10 = vld [vmem:[%s3450_s3 + $0xa8] sm:$0xff]  ;;  %v292_v12 = vld [vmem:[%s3450_s3 + $0xa0] sm:$0xff]  ;;  %v291_v14 = vld [vmem:[%s3450_s3 + $0x98] sm:$0xff] }
  0x20   :  { %165 = vmatprep.subr.mxu0 %v2181_v4  ;;  %1763 = vmatpush3.msra.mxu1 %v281_v45  ;;  %v277_v11 = vld [vmem:[%s3450_s3 + $0x28] sm:$0xff]  ;;  %v276_v13 = vld [vmem:[%s3450_s3 + $0x20] sm:$0xff]  ;;  %v275_v15 = vld [vmem:[%s3450_s3 + $0x18] sm:$0xff] }
  0x21   :  { %166 = vmatpush1.msra.mxu0 %v98_v43  ;;  %1764 = vmatprep.subr.mxu1 %v296_v47  ;;  %v290_v16 = vld [vmem:[%s3450_s3 + $0x90] sm:$0xff]  ;;  %v289_v18 = vld [vmem:[%s3450_s3 + $0x88] sm:$0xff]  ;;  %v288_v20 = vld [vmem:[%s3450_s3 + $0x80] sm:$0xff] }
  0x22   :  { %167 = vmatprep.subr.mxu0 %v2181_v4  ;;  %1765 = vmatpush3.msra.mxu1 %v280_v48  ;;  %v274_v17 = vld [vmem:[%s3450_s3 + $0x10] sm:$0xff]  ;;  %v273_v19 = vld [vmem:[%s3450_s3 + $0x8] sm:$0xff]  ;;  %v272_v21 = vld [vmem:[%s3450_s3] sm:$0xff] }
  0x23   :  { %168 = vmatpush1.msra.mxu0 %v97_v46  ;;  %1766 = vmatprep.subr.mxu1 %v295_v50  ;;  %v319_v22 = vld [vmem:[%s3450_s3 + $0x178] sm:$0xff]  ;;  %v1741_v23 = vld [vmem:[%s3449_s2] ss:$0 sm:$0xff]  ;;  %v318_v38 = vld [vmem:[%s3450_s3 + $0x170] sm:$0xff] }
  0x24   :  { %169 = vmatprep.subr.mxu0 %v2181_v4  ;;  %1767 = vmatpush3.msra.mxu1 %v279_v51  ;;  %v317_v40 = vld [vmem:[%s3450_s3 + $0x168] sm:$0xff]  ;;  %v316_v44 = vld [vmem:[%s3450_s3 + $0x160] sm:$0xff]  ;;  %v315_v45 = vld [vmem:[%s3450_s3 + $0x158] sm:$0xff] }
  0x25   :  { %170 = vmatpush1.msra.mxu0 %v96_v49  ;;  %1768 = vmatprep.subr.mxu1 %v294_v53  ;;  %v314_v47 = vld [vmem:[%s3450_s3 + $0x150] sm:$0xff]  ;;  %v313_v48 = vld [vmem:[%s3450_s3 + $0x148] sm:$0xff]  ;;  %v312_v50 = vld [vmem:[%s3450_s3 + $0x140] sm:$0xff] }
  0x26   :  { %187 = vmatprep.subr.mxu0 %v2181_v4  ;;  %1769 = vmatpush3.msra.mxu1 %v278_v9  ;;  %v310_v53 = vld [vmem:[%s3450_s3 + $0x130] sm:$0xff] }
  0x27   :  { %188 = vmatpush2.msra.mxu0 %v119_v52  ;;  %1770 = vmatprep.subr.mxu1 %v293_v10  ;;  %v311_v52 = vld [vmem:[%s3450_s3 + $0x138] sm:$0xff]  ;;  %v773_v9 = vld [vmem:[%s3452_s5 + $0x170] sm:$0xff]  ;;  %v755_v10 = vld [vmem:[%s3452_s5 + $0xe0] sm:$0xff] }
  0x28   :  { %189 = vmatprep.subr.mxu0 %v2181_v4  ;;  %1771 = vmatpush3.msra.mxu1 %v277_v11  ;;  %v788_v11 = vld [vmem:[%s3452_s5 + $0x1e8] sm:$0xff] }
  0x29   :  { %190 = vmatpush2.msra.mxu0 %v118_v54  ;;  %1772 = vmatprep.subr.mxu1 %v292_v12  ;;  %v309_v54 = vld [vmem:[%s3450_s3 + $0x128] sm:$0xff]  ;;  %v739_v12 = vld [vmem:[%s3452_s5 + $0x60] sm:$0xff] }
  0x2a   :  { %191 = vmatprep.subr.mxu0 %v2181_v4  ;;  %1773 = vmatpush3.msra.mxu1 %v276_v13  ;;  %v772_v13 = vld [vmem:[%s3452_s5 + $0x168] sm:$0xff] }
  0x2b   :  { %192 = vmatpush2.msra.mxu0 %v117_v55  ;;  %1774 = vmatprep.subr.mxu1 %v291_v14  ;;  %v308_v55 = vld [vmem:[%s3450_s3 + $0x120] sm:$0xff]  ;;  %v754_v14 = vld [vmem:[%s3452_s5 + $0xd8] sm:$0xff] }
  0x2c   :  { %193 = vmatprep.subr.mxu0 %v2181_v4  ;;  %1775 = vmatpush3.msra.mxu1 %v275_v15  ;;  %v787_v15 = vld [vmem:[%s3452_s5 + $0x1e0] sm:$0xff] }
  0x2d   :  { %194 = vmatpush2.msra.mxu0 %v116_v56  ;;  %1776 = vmatprep.subr.mxu1 %v290_v16  ;;  %v307_v56 = vld [vmem:[%s3450_s3 + $0x118] sm:$0xff] }
  0x2e   :  { %195 = vmatprep.subr.mxu0 %v2181_v4  ;;  %1777 = vmatpush3.msra.mxu1 %v274_v17  ;;  %v738_v16 = vld [vmem:[%s3452_s5 + $0x58] sm:$0xff]  ;;  %v771_v17 = vld [vmem:[%s3452_s5 + $0x160] sm:$0xff] }
  0x2f   :  { %196 = vmatpush2.msra.mxu0 %v115_v57  ;;  %1778 = vmatprep.subr.mxu1 %v289_v18  ;;  %v306_v57 = vld [vmem:[%s3450_s3 + $0x110] sm:$0xff] }
  0x30   :  { %197 = vmatprep.subr.mxu0 %v2181_v4  ;;  %1779 = vmatpush3.msra.mxu1 %v273_v19  ;;  %v753_v18 = vld [vmem:[%s3452_s5 + $0xd0] sm:$0xff]  ;;  %v786_v19 = vld [vmem:[%s3452_s5 + $0x1d8] sm:$0xff] }
  0x31   :  { %198 = vmatpush2.msra.mxu0 %v114_v58  ;;  %1780 = vmatprep.subr.mxu1 %v288_v20  ;;  %v305_v58 = vld [vmem:[%s3450_s3 + $0x108] sm:$0xff]  ;;  %v737_v20 = vld [vmem:[%s3452_s5 + $0x50] sm:$0xff] }
  0x32   :  { %199 = vmatprep.subr.mxu0 %v2181_v4  ;;  %1781 = vmatpush3.msra.mxu1 %v272_v21  ;;  %v770_v21 = vld [vmem:[%s3452_s5 + $0x158] sm:$0xff] }
  0x33   :  { %200 = vmatpush2.msra.mxu0 %v113_v59  ;;  %2099 = vmatprep.subr.mxu1 %v319_v22  ;;  %v304_v59 = vld [vmem:[%s3450_s3 + $0x100] sm:$0xff] }
  0x34   :  { %201 = vmatprep.subr.mxu0 %v2181_v4 }
  0x35   :  { %202 = vmatpush2.msra.mxu0 %v112_v60 }
  0x7c   :  { %v64_v61 = vpop.permute.xlu0 %63 }
  0x7d   :  { %v68_v62 = vpop.permute.xlu1 %67  ;;  %76 = vst.msk [vmem:[#allocation3] sm:$0xff] %vm75_vm2, %v64_v61 }
  0x7e   :  { %78 = vst.msk [vmem:[#allocation3 + $0x20] sm:$0xff] %vm75_vm2, %v68_v62 }
  0x80   :  { %v66_v63 = vpop.permute.xlu0 %65 }
  0x81   :  { %v70_v0 = vpop.permute.xlu1 %69  ;;  %77 = vst.msk [vmem:[#allocation3 + $0x10] sm:$0xff] %vm75_vm2, %v66_v63  ;;  %v758_v63 = vld [vmem:[%s3452_s5 + $0xf8] sm:$0xff] }
  0x82   :  { %79 = vst.msk [vmem:[#allocation3 + $0x30] sm:$0xff] %vm75_vm2, %v70_v0  ;;  %1814 = vmatprep.subr.mxu0 %v758_v63  ;;  %v742_v0 = vld [vmem:[%s3452_s5 + $0x78] sm:$0xff] }
  0x83   :  { %v822_v63 = vld [vmem:[%s3452_s5 + $0x2f8] sm:$0xff] }
  0x84   :  { %v88_v2 = vld [vmem:[#allocation3] sm:$0xff] }
  0x85   :  { %204 = vmatmul.mubr.f32.vlgmr.msra.gmra.mxu0 %v88_v2  ;;  %v92_v6 = vld [vmem:[#allocation3 + $0x20] sm:$0xff]  ;;  %v790_v2 = vld [vmem:[%s3452_s5 + $0x1f8] sm:$0xff] }
  0x86   :  { %1743 = vmatprep.mubr.msk.f32.mxu0 %vm42_vm0, %v91_v1  ;;  %1815 = vmatpush3.msra.mxu0 %v742_v0  ;;  %v757_v1 = vld [vmem:[%s3452_s5 + $0xf0] sm:$0xff]  ;;  %v759_v0 = vld [vmem:[%s3452_s5 + $0x100] sm:$0xff] }
  0x87   :  { %1816 = vmatprep.subr.mxu0 %v757_v1  ;;  %v854_v1 = vld [vmem:[%s3452_s5 + $0x3f8] sm:$0xff] }
  0x88   :  { %v90_v5 = vld [vmem:[#allocation3 + $0x10] sm:$0xff] }
  0x89   :  { %209 = vmatmul.mubr.f32.gmra.mxu0 %v90_v5  ;;  %v94_v8 = vld [vmem:[#allocation3 + $0x30] sm:$0xff]  ;;  %v774_v5 = vld [vmem:[%s3452_s5 + $0x178] sm:$0xff] }
  0x8a   :  { %1744 = vmatprep.mubr.msk.f32.mxu0 %vm42_vm0, %v93_v3  ;;  %v741_v3 = vld [vmem:[%s3452_s5 + $0x70] sm:$0xff] }
  0x8b   :  { %1817 = vmatpush3.msra.mxu0 %v741_v3 }
  0x8d   :  { %214 = vmatmul.mubr.f32.gmra.mxu0 %v92_v6  ;;  %v756_v6 = vld [vmem:[%s3452_s5 + $0xe8] sm:$0xff] }
  0x8e   :  { %1745 = vmatprep.mubr.msk.f32.mxu0 %vm42_vm0, %v95_v7  ;;  %v789_v7 = vld [vmem:[%s3452_s5 + $0x1f0] sm:$0xff]  ;;  %1818 = vmatprep.subr.mxu0 %v756_v6 }
  0x91   :  { %219 = vmatmul.mubr.f32.gmra.mxu0 %v94_v8  ;;  %v740_v8 = vld [vmem:[%s3452_s5 + $0x68] sm:$0xff] }
  0x92   :  { %1819 = vmatpush3.msra.mxu0 %v740_v8 }
  0x93   :  { %1820 = vmatprep.subr.mxu0 %v755_v10  ;;  %v2183_v10 = vmov 1983009808  }
  0x94   :  { %1821 = vmatpush3.msra.mxu0 %v739_v12  ;;  %v506_v12 = vlaneseq }
  0x95   :  { %1822 = vmatprep.subr.mxu0 %v754_v14 }
  0x96   :  { %1823 = vmatpush3.msra.mxu0 %v738_v16 }
  0x97   :  { %1824 = vmatprep.subr.mxu0 %v753_v18  ;;  %v1746_v18 = vld [vmem:[%s3451_s4] ss:$0 sm:$0xff]  ;;  %s1733_s4 = sshll.u32 %s2185_s12, 4  ;;  %s1734_s4 = int_to_ptr.vmem [resolvable:$true] %s1733_s4 }
  0x98   :  { %1825 = vmatpush3.msra.mxu0 %v737_v20  ;;  %s2159_s13 = scalar_lea.vmem %s1734_s4, 32  ;;  %p2164_p1 = scmp.lt.s32.totalorder %s1734_s4, %s1734_s4 }
  0x99   :  { %p2160_p0 = scmp.ne.s32.totalorder %s1734_s4, %s2159_s13  ;;  %p2165_p2 = scmp.lt.s32.totalorder %s2159_s13, %s2159_s13 }
  0x9b   :  { %p2166_p3 = por %p2165_p2, %p2164_p1 }
  0x9d   :  { %p2167_p4 = pnand %p2166_p3, %p2160_p0 }
 0x145   :  { %v205_v24 = vpop.f32.mrf.mxu0 }
 0x146   :  { %v206_v25 = vadd.f32 %v1741_v23, %v205_v24  ;;  %v736_v24 = vld [vmem:[%s3452_s5 + $0x48] sm:$0xff] }
 0x147   :  { %v207_v26 = vpop.f32.mrf.mxu0 }
 0x148   :  { %v224_v27 = vmax.f32 %v206_v25, 0.0  ;;  %v769_v25 = vld [vmem:[%s3452_s5 + $0x150] sm:$0xff]  ;;  %v751_v26 = vld [vmem:[%s3452_s5 + $0xc0] sm:$0xff] }
 0x149   :  { %v210_v28 = vpop.f32.mrf.mxu0 }
 0x14a   :  { %232 = vst [vmem:[#allocation4 + $0x1] sm:$0xff] %v224_v27  ;;  %v211_v29 = vadd.f32 %v1741_v23, %v210_v28  ;;  %391 = vmatprep.mubr.f32.mxu1 %v224_v27  ;;  %v784_v27 = vld [vmem:[%s3452_s5 + $0x1c8] sm:$0xff]  ;;  %v735_v28 = vld [vmem:[%s3452_s5 + $0x40] sm:$0xff] }
 0x14b   :  { %v212_v30 = vpop.f32.mrf.mxu0 }
 0x14c   :  { %v225_v31 = vmax.f32 %v211_v29, 0.0  ;;  %v768_v29 = vld [vmem:[%s3452_s5 + $0x148] sm:$0xff]  ;;  %v750_v30 = vld [vmem:[%s3452_s5 + $0xb8] sm:$0xff] }
 0x14d   :  { %v215_v32 = vpop.f32.mrf.mxu0 }
 0x14e   :  { %233 = vst [vmem:[#allocation4 + $0x9] sm:$0xff] %v225_v31  ;;  %v216_v33 = vadd.f32 %v1741_v23, %v215_v32  ;;  %v734_v32 = vld [vmem:[%s3452_s5 + $0x38] sm:$0xff] }
 0x14f   :  { %v217_v34 = vpop.f32.mrf.mxu0 }
 0x150   :  { %v226_v35 = vmax.f32 %v216_v33, 0.0  ;;  %v767_v33 = vld [vmem:[%s3452_s5 + $0x140] sm:$0xff]  ;;  %v749_v34 = vld [vmem:[%s3452_s5 + $0xb0] sm:$0xff] }
 0x151   :  { %v220_v36 = vpop.f32.mrf.mxu0  ;;  %v236_v37 = vld [vmem:[#allocation4] sm:$0xff] }
 0x152   :  { %234 = vst [vmem:[#allocation4 + $0x19] sm:$0xff] %v226_v35  ;;  %v221_v39 = vadd.f32 %v1741_v23, %v220_v36  ;;  %392 = vmatmul.mubr.f32.vlgmr.msra.gmra.mxu1 %v236_v37  ;;  %v785_v23 = vld [vmem:[%s3452_s5 + $0x1d0] sm:$0xff]  ;;  %v766_v37 = vld [vmem:[%s3452_s5 + $0x138] sm:$0xff] }
 0x153   :  { %2100 = vmatpush3.msra.mxu1 %v319_v22  ;;  %396 = vmatprep.mubr.f32.mxu1 %v225_v31  ;;  %v222_v41 = vpop.f32.mrf.mxu0  ;;  %v752_v22 = vld [vmem:[%s3452_s5 + $0xc8] sm:$0xff]  ;;  %v783_v31 = vld [vmem:[%s3452_s5 + $0x1c0] sm:$0xff]  ;;  %v733_v36 = vld [vmem:[%s3452_s5 + $0x30] sm:$0xff] }
 0x154   :  { %v227_v42 = vmax.f32 %v221_v39, 0.0  ;;  %2101 = vmatprep.subr.mxu1 %v318_v38  ;;  %1826 = vmatprep.subr.mxu0 %v752_v22  ;;  %v781_v39 = vld [vmem:[%s3452_s5 + $0x1b0] sm:$0xff] }
 0x155   :  { %2102 = vmatpush3.msra.mxu1 %v318_v38  ;;  %v237_v43 = vld [vmem:[#allocation4 + $0x8] sm:$0xff]  ;;  %1827 = vmatpush3.msra.mxu0 %v736_v24  ;;  %v748_v38 = vld [vmem:[%s3452_s5 + $0xa8] sm:$0xff]  ;;  %v765_v41 = vld [vmem:[%s3452_s5 + $0x130] sm:$0xff] }
 0x156   :  { %235 = vst [vmem:[#allocation4 + $0x21] sm:$0xff] %v227_v42  ;;  %2103 = vmatprep.subr.mxu1 %v317_v40  ;;  %397 = vmatmul.mubr.f32.gmra.mxu1 %v237_v43  ;;  %v252_v51 = vld [vmem:[#allocation4 + $0x2] sm:$0xff]  ;;  %v253_v60 = vld [vmem:[#allocation4 + $0xa] sm:$0xff]  ;;  %v780_v43 = vld [vmem:[%s3452_s5 + $0x1a8] sm:$0xff] }
 0x157   :  { %2104 = vmatpush3.msra.mxu1 %v317_v40  ;;  %401 = vmatprep.mubr.f32.mxu1 %v226_v35  ;;  %v782_v35 = vld [vmem:[%s3452_s5 + $0x1b8] sm:$0xff]  ;;  %v732_v40 = vld [vmem:[%s3452_s5 + $0x28] sm:$0xff] }
 0x158   :  { %2105 = vmatprep.subr.mxu1 %v316_v44  ;;  %1828 = vmatprep.subr.mxu0 %v751_v26 }
 0x159   :  { %2106 = vmatpush3.msra.mxu1 %v316_v44  ;;  %v238_v46 = vld [vmem:[#allocation4 + $0x18] sm:$0xff]  ;;  %1829 = vmatpush3.msra.mxu0 %v735_v28  ;;  %v731_v44 = vld [vmem:[%s3452_s5 + $0x20] sm:$0xff] }
 0x15a   :  { %2107 = vmatprep.subr.mxu1 %v315_v45  ;;  %402 = vmatmul.mubr.f32.gmra.mxu1 %v238_v46  ;;  %v746_v46 = vld [vmem:[%s3452_s5 + $0x98] sm:$0xff] }
 0x15b   :  { %2108 = vmatpush3.msra.mxu1 %v315_v45  ;;  %406 = vmatprep.mubr.f32.mxu1 %v227_v42  ;;  %v747_v42 = vld [vmem:[%s3452_s5 + $0xa0] sm:$0xff]  ;;  %v764_v45 = vld [vmem:[%s3452_s5 + $0x128] sm:$0xff] }
 0x15c   :  { %2109 = vmatprep.subr.mxu1 %v314_v47  ;;  %1830 = vmatprep.subr.mxu0 %v750_v30 }
 0x15d   :  { %2110 = vmatpush3.msra.mxu1 %v314_v47  ;;  %v239_v49 = vld [vmem:[#allocation4 + $0x20] sm:$0xff]  ;;  %1831 = vmatpush3.msra.mxu0 %v734_v32  ;;  %v779_v47 = vld [vmem:[%s3452_s5 + $0x1a0] sm:$0xff] }
 0x15e   :  { %2111 = vmatprep.subr.mxu1 %v313_v48  ;;  %407 = vmatmul.mubr.f32.gmra.mxu1 %v239_v49  ;;  %v254_v61 = vld [vmem:[#allocation4 + $0x1a] sm:$0xff]  ;;  %v255_v62 = vld [vmem:[#allocation4 + $0x22] sm:$0xff]  ;;  %v763_v49 = vld [vmem:[%s3452_s5 + $0x120] sm:$0xff] }
 0x15f   :  { %2112 = vmatpush3.msra.mxu1 %v313_v48  ;;  %2131 = vmatprep.mubr.f32.mxu1 %v252_v51  ;;  %v730_v48 = vld [vmem:[%s3452_s5 + $0x18] sm:$0xff] }
 0x160   :  { %2113 = vmatprep.subr.mxu1 %v312_v50  ;;  %1832 = vmatprep.subr.mxu0 %v749_v34  ;;  %v778_v51 = vld [vmem:[%s3452_s5 + $0x198] sm:$0xff] }
 0x161   :  { %2114 = vmatpush3.msra.mxu1 %v312_v50  ;;  %1833 = vmatpush3.msra.mxu0 %v733_v36  ;;  %v745_v50 = vld [vmem:[%s3452_s5 + $0x90] sm:$0xff] }
 0x162   :  { %2115 = vmatprep.subr.mxu1 %v311_v52  ;;  %1834 = vmatprep.subr.mxu0 %v748_v38 }
 0x163   :  { %2116 = vmatpush3.msra.mxu1 %v311_v52  ;;  %1835 = vmatpush3.msra.mxu0 %v732_v40  ;;  %v729_v52 = vld [vmem:[%s3452_s5 + $0x10] sm:$0xff] }
 0x164   :  { %2117 = vmatprep.subr.mxu1 %v310_v53  ;;  %1836 = vmatprep.subr.mxu0 %v747_v42 }
 0x165   :  { %2118 = vmatpush3.msra.mxu1 %v310_v53  ;;  %1837 = vmatpush3.msra.mxu0 %v731_v44  ;;  %v762_v53 = vld [vmem:[%s3452_s5 + $0x118] sm:$0xff] }
 0x166   :  { %2119 = vmatprep.subr.mxu1 %v309_v54  ;;  %1838 = vmatprep.subr.mxu0 %v746_v46 }
 0x167   :  { %2120 = vmatpush3.msra.mxu1 %v309_v54  ;;  %1839 = vmatpush3.msra.mxu0 %v730_v48  ;;  %v744_v54 = vld [vmem:[%s3452_s5 + $0x88] sm:$0xff] }
 0x168   :  { %2121 = vmatprep.subr.mxu1 %v308_v55  ;;  %1840 = vmatprep.subr.mxu0 %v745_v50 }
 0x169   :  { %2122 = vmatpush3.msra.mxu1 %v308_v55  ;;  %v777_v55 = vld [vmem:[%s3452_s5 + $0x190] sm:$0xff]  ;;  %1841 = vmatpush3.msra.mxu0 %v729_v52 }
 0x16a   :  { %2123 = vmatprep.subr.mxu1 %v307_v56  ;;  %1842 = vmatprep.subr.mxu0 %v744_v54 }
 0x16b   :  { %2124 = vmatpush3.msra.mxu1 %v307_v56  ;;  %v728_v56 = vld [vmem:[%s3452_s5 + $0x8] sm:$0xff] }
 0x16c   :  { %2125 = vmatprep.subr.mxu1 %v306_v57  ;;  %1843 = vmatpush3.msra.mxu0 %v728_v56 }
 0x16d   :  { %2126 = vmatpush3.msra.mxu1 %v306_v57  ;;  %v761_v57 = vld [vmem:[%s3452_s5 + $0x110] sm:$0xff] }
 0x16e   :  { %2127 = vmatprep.subr.mxu1 %v305_v58 }
 0x16f   :  { %2128 = vmatpush3.msra.mxu1 %v305_v58  ;;  %v743_v58 = vld [vmem:[%s3452_s5 + $0x80] sm:$0xff] }
 0x170   :  { %2129 = vmatprep.subr.mxu1 %v304_v59  ;;  %1844 = vmatprep.subr.mxu0 %v743_v58 }
 0x171   :  { %2130 = vmatpush3.msra.mxu1 %v304_v59  ;;  %v776_v59 = vld [vmem:[%s3452_s5 + $0x188] sm:$0xff] }
 0x172   :  { %2132 = vmatmul.mubr.f32.vlgmr.msra.gmra.mxu1 %v253_v60  ;;  %1849 = vmatprep.subr.mxu1 %v790_v2  ;;  %v727_v60 = vld [vmem:[%s3452_s5] sm:$0xff] }
 0x173   :  { %2134 = vmatprep.mubr.f32.mxu1 %v254_v61  ;;  %1850 = vmatpush3.msra.mxu1 %v774_v5  ;;  %v760_v61 = vld [vmem:[%s3452_s5 + $0x108] sm:$0xff] }
 0x174   :  { %1851 = vmatprep.subr.mxu1 %v789_v7  ;;  %1845 = vmatpush3.msra.mxu0 %v727_v60 }
 0x175   :  { %1852 = vmatpush3.msra.mxu1 %v773_v9  ;;  %1884 = vmatprep.subr.mxu0 %v822_v63 }
 0x176   :  { %2135 = vmatmul.mubr.f32.gmra.mxu1 %v255_v62  ;;  %1853 = vmatprep.subr.mxu1 %v788_v11  ;;  %v775_v62 = vld [vmem:[%s3452_s5 + $0x180] sm:$0xff]  ;;  %v504_v11 = vunpack.c.l.s4 %v2183_v10 }
 0x177   :  { %1854 = vmatpush3.msra.mxu1 %v772_v13 }
 0x178   :  { %1855 = vmatprep.subr.mxu1 %v787_v15  ;;  %v505_v16 = vunpack.c.0.s8 %v504_v11 }
 0x179   :  { %1856 = vmatpush3.msra.mxu1 %v771_v17  ;;  %v507_v17 = vshrl.u32 %v506_v12, 7 }
 0x17a   :  { %1857 = vmatprep.subr.mxu1 %v786_v19 }
 0x17b   :  { %1858 = vmatpush3.msra.mxu1 %v770_v21 }
 0x17c   :  { %1859 = vmatprep.subr.mxu1 %v785_v23  ;;  %v2716_v23 = vsub.s32 %v505_v16, %v507_v17 }
 0x17d   :  { %1860 = vmatpush3.msra.mxu1 %v769_v25 }
 0x17e   :  { %1861 = vmatprep.subr.mxu1 %v784_v27 }
 0x17f   :  { %1862 = vmatpush3.msra.mxu1 %v768_v29 }
 0x180   :  { %1863 = vmatprep.subr.mxu1 %v783_v31 }
 0x181   :  { %1864 = vmatpush3.msra.mxu1 %v767_v33 }
 0x182   :  { %1865 = vmatprep.subr.mxu1 %v782_v35 }
 0x183   :  { %1866 = vmatpush3.msra.mxu1 %v766_v37 }
 0x184   :  { %1867 = vmatprep.subr.mxu1 %v781_v39 }
 0x185   :  { %1868 = vmatpush3.msra.mxu1 %v765_v41 }
 0x186   :  { %1869 = vmatprep.subr.mxu1 %v780_v43 }
 0x187   :  { %1870 = vmatpush3.msra.mxu1 %v764_v45 }
 0x188   :  { %1871 = vmatprep.subr.mxu1 %v779_v47 }
 0x189   :  { %1872 = vmatpush3.msra.mxu1 %v763_v49 }
 0x18a   :  { %1873 = vmatprep.subr.mxu1 %v778_v51 }
 0x18b   :  { %1874 = vmatpush3.msra.mxu1 %v762_v53 }
 0x18c   :  { %1875 = vmatprep.subr.mxu1 %v777_v55 }
 0x18d   :  { %1876 = vmatpush3.msra.mxu1 %v761_v57 }
 0x18e   :  { %1877 = vmatprep.subr.mxu1 %v776_v59 }
 0x18f   :  { %1878 = vmatpush3.msra.mxu1 %v760_v61 }
 0x190   :  { %1879 = vmatprep.subr.mxu1 %v775_v62 }
 0x191   :  { %1880 = vmatpush3.msra.mxu1 %v759_v0 }
 0x192   :  { %1919 = vmatprep.subr.mxu1 %v854_v1 }
 0x212   :  { %v1782_v2 = vpop.f32.mrf.mxu1 }
 0x214   :  { %v1783_v3 = vpop.f32.mrf.mxu1 }
 0x215   :  { %v1784_v15 = vadd.f32 %v1783_v3, %v1782_v2 }
 0x216   :  { %v1785_v5 = vpop.f32.mrf.mxu1 }
 0x217   :  { %v394_v24 = vadd.f32 %v1784_v15, %v1746_v18 }
 0x218   :  { %v1786_v6 = vpop.f32.mrf.mxu1 }
 0x219   :  { %v1787_v13 = vadd.f32 %v1786_v6, %v1785_v5 }
 0x21a   :  { %v1788_v7 = vpop.f32.mrf.mxu1 }
 0x21b   :  { %v399_v20 = vadd.f32 %v1787_v13, %v1746_v18 }
 0x21c   :  { %v1789_v8 = vpop.f32.mrf.mxu1 }
 0x21d   :  { %v1790_v25 = vadd.f32 %v1789_v8, %v1788_v7 }
 0x21e   :  { %v1791_v9 = vpop.f32.mrf.mxu1 }
 0x21f   :  { %v404_v35 = vadd.f32 %v1790_v25, %v1746_v18 }
 0x220   :  { %v1792_v14 = vpop.f32.mrf.mxu1 }
 0x221   :  { %v1793_v19 = vadd.f32 %v1792_v14, %v1791_v9 }
 0x223   :  { %v409_v29 = vadd.f32 %v1793_v19, %v1746_v18 }
 0x232   :  { %v2133_v21 = vpop.f32.mrf.mxu1 }
 0x233   :  { %v484_v22 = vadd.f32 %v2133_v21, %v399_v20 }
 0x234   :  { %v478_v26 = vpop.f32.mrf.mxu1 }
 0x235   :  { %v498_v27 = vmax.f32 %v484_v22, 0.0  ;;  %v479_v28 = vadd.f32 %v478_v26, %v394_v24 }
 0x236   :  { %v2136_v30 = vpop.f32.mrf.mxu1 }
 0x237   :  { %v623_v31 = vrot.slane %v498_v27, %v2716_v23  ;;  %v669_v32 = vcombine.high %v498_v27, %v498_v27  ;;  %v497_v33 = vmax.f32 %v479_v28, 0.0  ;;  %v494_v34 = vadd.f32 %v2136_v30, %v409_v29 }
 0x238   :  { %v488_v36 = vpop.f32.mrf.mxu1 }
 0x239   :  { %v649_v37 = vcombine.high %v623_v31, %v623_v31  ;;  %v676_v38 = vrot.slane %v669_v32, %v2716_v23  ;;  %v509_v39 = vrot.slane %v497_v33, %v2716_v23  ;;  %v561_v40 = vcombine.high %v497_v33, %v497_v33 }
 0x23a   :  { %v500_v41 = vmax.f32 %v494_v34, 0.0  ;;  %v489_v42 = vadd.f32 %v488_v36, %v404_v35  ;;  %v640_v43 = vrot.slane %v623_v31, 1 }
 0x23b   :  { %v660_v44 = vrot.slane %v649_v37, 1  ;;  %v703_v45 = vcombine.high %v676_v38, %v676_v38  ;;  %v2721_v46 = vcombine.high %v509_v39, %v509_v39  ;;  %v2724_v47 = vrot.slane %v561_v40, %v2716_v23 }
 0x23c   :  { %v630_v48 = vrot.slane %v500_v41, %v2716_v23  ;;  %v677_v49 = vcombine.high %v500_v41, %v500_v41  ;;  %v694_v50 = vrot.slane %v676_v38, 1  ;;  %v532_v52 = vrot.slane %v509_v39, 1 }
 0x23d   :  { %v714_v51 = vrot.slane %v703_v45, 1  ;;  %v2727_v53 = vmax.f32 %v489_v42, 0.0  ;;  %v552_v54 = vrot.slane %v2721_v46, 1  ;;  %v586_v55 = vrot.slane %v2724_v47, 1 }
 0x23e   :  { %v2733_v56 = vcombine.high %v2724_v47, %v2724_v47  ;;  %v633_v57 = vrot.slane %v630_v48, 7  ;;  %v643_v58 = vsel %vm522_vm3, %v630_v48, %v640_v43  ;;  %v650_v59 = vcombine.high %v630_v48, %v630_v48 }
 0x23f   :  { %v684_v60 = vrot.slane %v677_v49, %v2716_v23  ;;  %v516_v61 = vrot.slane %v2727_v53, %v2716_v23  ;;  %v644_v0 = vsel %vm524_vm4, %v630_v48, %v643_v58  ;;  %v569_v1 = vcombine.high %v2727_v53, %v2727_v53 }
 0x240   :  { %v606_v62 = vrot.slane %v2733_v56, 1  ;;  %v634_v63 = vsel %vm522_vm3, %v633_v57, %v623_v31  ;;  %v645_v3 = vsel %vm526_vm5, %v630_v48, %v644_v0  ;;  %v653_v5 = vrot.slane %v650_v59, 7 }
 0x241   :  { %v635_v2 = vsel %vm524_vm4, %v633_v57, %v634_v63  ;;  %v663_v6 = vsel %vm522_vm3, %v650_v59, %v660_v44  ;;  %v646_v8 = vsel %vm528_vm6, %v630_v48, %v645_v3  ;;  %v687_v10 = vrot.slane %v684_v60, 7 }
 0x242   :  { %v636_v7 = vsel %vm526_vm5, %v633_v57, %v635_v2  ;;  %v664_v9 = vsel %vm524_vm4, %v650_v59, %v663_v6  ;;  %648 = vst [vmem:[#allocation6 + $0x12] sm:$0x3] %v646_v8  ;;  %v654_v12 = vsel %vm522_vm3, %v653_v5, %v649_v37  ;;  %v697_v14 = vsel %vm522_vm3, %v684_v60, %v694_v50 }
 0x243   :  { %v637_v11 = vsel %vm528_vm6, %v633_v57, %v636_v7  ;;  %v665_v13 = vsel %vm526_vm5, %v650_v59, %v664_v9  ;;  %v655_v15 = vsel %vm524_vm4, %v653_v5, %v654_v12  ;;  %v688_v17 = vsel %vm522_vm3, %v687_v10, %v676_v38 }
 0x244   :  { %639 = vst [vmem:[#allocation6 + $0x10] sm:$0x3] %v637_v11  ;;  %v666_v16 = vsel %vm528_vm6, %v650_v59, %v665_v13  ;;  %v698_v18 = vsel %vm524_vm4, %v684_v60, %v697_v14  ;;  %v689_v19 = vsel %vm524_vm4, %v687_v10, %v688_v17  ;;  %v704_v21 = vcombine.high %v684_v60, %v684_v60 }
 0x245   :  { %668 = vst [vmem:[#allocation6 + $0x16] sm:$0x3] %v666_v16  ;;  %v699_v20 = vsel %vm526_vm5, %v684_v60, %v698_v18  ;;  %v521_v22 = vrot.slane %v516_v61, 7  ;;  %v690_v24 = vsel %vm526_vm5, %v687_v10, %v689_v19  ;;  %v535_v26 = vsel %vm522_vm3, %v516_v61, %v532_v52  ;;  %v806_v18 = vld [vmem:[%s3452_s5 + $0x278] sm:$0xff] }
 0x246   :  { %v700_v25 = vsel %vm528_vm6, %v684_v60, %v699_v20  ;;  %v542_v27 = vcombine.high %v516_v61, %v516_v61  ;;  %v691_v28 = vsel %vm528_vm6, %v687_v10, %v690_v24  ;;  %v707_v29 = vrot.slane %v704_v21, 7 }
 0x247   :  { %702 = vst [vmem:[#allocation6 + $0x1a] sm:$0x3] %v700_v25  ;;  %v717_v30 = vsel %vm522_vm3, %v704_v21, %v714_v51  ;;  %v523_v31 = vsel %vm522_vm3, %v521_v22, %v509_v39  ;;  %693 = vst [vmem:[#allocation6 + $0x18] sm:$0x3] %v691_v28  ;;  %v536_v34 = vsel %vm524_vm4, %v516_v61, %v535_v26  ;;  %v805_v25 = vld [vmem:[%s3452_s5 + $0x270] sm:$0xff]  ;;  %v820_v28 = vld [vmem:[%s3452_s5 + $0x2e8] sm:$0xff] }
 0x248   :  { %v718_v32 = vsel %vm524_vm4, %v704_v21, %v717_v30  ;;  %v525_v33 = vsel %vm524_vm4, %v521_v22, %v523_v31  ;;  %v545_v35 = vrot.slane %v542_v27, 7  ;;  %v708_v36 = vsel %vm522_vm3, %v707_v29, %v703_v45  ;;  %v853_v30 = vld [vmem:[%s3452_s5 + $0x3f0] sm:$0xff] }
 0x249   :  { %v719_v37 = vsel %vm526_vm5, %v704_v21, %v718_v32  ;;  %v527_v38 = vsel %vm526_vm5, %v521_v22, %v525_v33  ;;  %v537_v40 = vsel %vm526_vm5, %v516_v61, %v536_v34  ;;  %v709_v41 = vsel %vm524_vm4, %v707_v29, %v708_v36  ;;  %v804_v32 = vld [vmem:[%s3452_s5 + $0x268] sm:$0xff]  ;;  %v837_v33 = vld [vmem:[%s3452_s5 + $0x370] sm:$0xff]  ;;  %v819_v34 = vld [vmem:[%s3452_s5 + $0x2e0] sm:$0xff] }
 0x24a   :  { %v720_v39 = vsel %vm528_vm6, %v704_v21, %v719_v37  ;;  %v529_v42 = vsel %vm528_vm6, %v521_v22, %v527_v38  ;;  %v538_v43 = vsel %vm528_vm6, %v516_v61, %v537_v40  ;;  %v546_v44 = vsel %vm522_vm3, %v545_v35, %v2721_v46  ;;  %v821_v21 = vld [vmem:[%s3452_s5 + $0x2f0] sm:$0xff]  ;;  %v803_v36 = vld [vmem:[%s3452_s5 + $0x260] sm:$0xff]  ;;  %v836_v37 = vld [vmem:[%s3452_s5 + $0x368] sm:$0xff] }
 0x24b   :  { %722 = vst [vmem:[#allocation6 + $0x1e] sm:$0x3] %v720_v39  ;;  %531 = vst [vmem:[#allocation6] sm:$0x3] %v529_v42  ;;  %v555_v45 = vsel %vm522_vm3, %v542_v27, %v552_v54  ;;  %v576_v48 = vrot.slane %v569_v1, %v2716_v23  ;;  %v656_v49 = vsel %vm526_vm5, %v653_v5, %v655_v15  ;;  %v818_v38 = vld [vmem:[%s3452_s5 + $0x2d8] sm:$0xff]  ;;  %v851_v40 = vld [vmem:[%s3452_s5 + $0x3e0] sm:$0xff] }
 0x24c   :  { %540 = vst [vmem:[#allocation6 + $0x2] sm:$0x3] %v538_v43  ;;  %v547_v50 = vsel %vm524_vm4, %v545_v35, %v546_v44  ;;  %v556_v51 = vsel %vm524_vm4, %v542_v27, %v555_v45  ;;  %v657_v52 = vsel %vm528_vm6, %v653_v5, %v656_v49  ;;  %v710_v53 = vsel %vm526_vm5, %v707_v29, %v709_v41  ;;  %v802_v41 = vld [vmem:[%s3452_s5 + $0x258] sm:$0xff]  ;;  %v835_v39 = vld [vmem:[%s3452_s5 + $0x360] sm:$0xff]  ;;  %v817_v42 = vld [vmem:[%s3452_s5 + $0x2d0] sm:$0xff] }
 0x24d   :  { %v557_v57 = vsel %vm526_vm5, %v542_v27, %v556_v51  ;;  %v579_v58 = vrot.slane %v576_v48, 7  ;;  %v589_v46 = vsel %vm522_vm3, %v576_v48, %v586_v55  ;;  %v596_v54 = vcombine.high %v576_v48, %v576_v48  ;;  %659 = vst [vmem:[#allocation6 + $0x14] sm:$0x3] %v657_v52  ;;  %v850_v43 = vld [vmem:[%s3452_s5 + $0x3d8] sm:$0xff]  ;;  %v801_v44 = vld [vmem:[%s3452_s5 + $0x250] sm:$0xff]  ;;  %v815_v52 = vld [vmem:[%s3452_s5 + $0x2c0] sm:$0xff] }
 0x24e   :  { %v558_v59 = vsel %vm528_vm6, %v542_v27, %v557_v57  ;;  %v590_v60 = vsel %vm524_vm4, %v576_v48, %v589_v46  ;;  %v548_v61 = vsel %vm526_vm5, %v545_v35, %v547_v50  ;;  %v711_v63 = vsel %vm528_vm6, %v707_v29, %v710_v53  ;;  %v838_v27 = vld [vmem:[%s3452_s5 + $0x378] sm:$0xff]  ;;  %v849_v49 = vld [vmem:[%s3452_s5 + $0x3d0] sm:$0xff]  ;;  %v800_v50 = vld [vmem:[%s3452_s5 + $0x248] sm:$0xff] }
 0x24f   :  { %560 = vst [vmem:[#allocation6 + $0x6] sm:$0x3] %v558_v59  ;;  %v580_v0 = vsel %vm522_vm3, %v579_v58, %v2724_v47  ;;  %v591_v1 = vsel %vm526_vm5, %v576_v48, %v590_v60  ;;  %v599_v2 = vrot.slane %v596_v54, 7  ;;  %v609_v55 = vsel %vm522_vm3, %v596_v54, %v606_v62  ;;  %713 = vst [vmem:[#allocation6 + $0x1c] sm:$0x3] %v711_v63  ;;  %v834_v45 = vld [vmem:[%s3452_s5 + $0x358] sm:$0xff] }
 0x250   :  { %v581_v3 = vsel %vm524_vm4, %v579_v58, %v580_v0  ;;  %v592_v5 = vsel %vm528_vm6, %v576_v48, %v591_v1  ;;  %v610_v6 = vsel %vm524_vm4, %v596_v54, %v609_v55  ;;  %v549_v7 = vsel %vm528_vm6, %v545_v35, %v548_v61  ;;  %v852_v35 = vld [vmem:[%s3452_s5 + $0x3e8] sm:$0xff]  ;;  %v833_v51 = vld [vmem:[%s3452_s5 + $0x350] sm:$0xff]  ;;  %v799_v57 = vld [vmem:[%s3452_s5 + $0x240] sm:$0xff] }
 0x251   :  { %v582_v8 = vsel %vm526_vm5, %v579_v58, %v581_v3  ;;  %594 = vst [vmem:[#allocation6 + $0xa] sm:$0x3] %v592_v5  ;;  %v600_v47 = vsel %vm522_vm3, %v599_v2, %v2733_v56  ;;  %v611_v9 = vsel %vm526_vm5, %v596_v54, %v610_v6  ;;  %551 = vst [vmem:[#allocation6 + $0x4] sm:$0x3] %v549_v7  ;;  %v816_v48 = vld [vmem:[%s3452_s5 + $0x2c8] sm:$0xff]  ;;  %v814_v46 = vld [vmem:[%s3452_s5 + $0x2b8] sm:$0xff] }
 0x252   :  { %v583_v62 = vsel %vm528_vm6, %v579_v58, %v582_v8  ;;  %v601_v10 = vsel %vm524_vm4, %v599_v2, %v600_v47  ;;  %v612_v11 = vsel %vm528_vm6, %v596_v54, %v611_v9  ;;  %v848_v53 = vld [vmem:[%s3452_s5 + $0x3c8] sm:$0xff]  ;;  %v847_v54 = vld [vmem:[%s3452_s5 + $0x3c0] sm:$0xff]  ;;  %v798_v59 = vld [vmem:[%s3452_s5 + $0x238] sm:$0xff] }
 0x253   :  { %585 = vst [vmem:[#allocation6 + $0x8] sm:$0x3] %v583_v62  ;;  %614 = vst [vmem:[#allocation6 + $0xe] sm:$0x3] %v612_v11  ;;  %v602_v12 = vsel %vm526_vm5, %v599_v2, %v601_v10  ;;  %v832_v58 = vld [vmem:[%s3452_s5 + $0x348] sm:$0xff]  ;;  %v831_v60 = vld [vmem:[%s3452_s5 + $0x340] sm:$0xff] }
 0x254   :  { %v603_v13 = vsel %vm528_vm6, %v599_v2, %v602_v12  ;;  %v813_v61 = vld [vmem:[%s3452_s5 + $0x2b0] sm:$0xff]  ;;  %v846_v63 = vld [vmem:[%s3452_s5 + $0x3b8] sm:$0xff]  ;;  %v812_v2 = vld [vmem:[%s3452_s5 + $0x2a8] sm:$0xff] }
 0x255   :  { %605 = vst [vmem:[#allocation6 + $0xc] sm:$0x3] %v603_v13  ;;  %v797_v0 = vld [vmem:[%s3452_s5 + $0x230] sm:$0xff]  ;;  %v830_v1 = vld [vmem:[%s3452_s5 + $0x338] sm:$0xff]  ;;  %v796_v3 = vld [vmem:[%s3452_s5 + $0x228] sm:$0xff] }
 0x256   :  { %v845_v55 = vld [vmem:[%s3452_s5 + $0x3b0] sm:$0xff]  ;;  %v811_v6 = vld [vmem:[%s3452_s5 + $0x2a0] sm:$0xff]  ;;  %v844_v7 = vld [vmem:[%s3452_s5 + $0x3a8] sm:$0xff] }
 0x257   :  { %v829_v5 = vld [vmem:[%s3452_s5 + $0x330] sm:$0xff]  ;;  %v795_v8 = vld [vmem:[%s3452_s5 + $0x220] sm:$0xff]  ;;  %v828_v47 = vld [vmem:[%s3452_s5 + $0x328] sm:$0xff] }
 0x258   :  { %v723_v14 = vld [vmem:[#allocation6] sm:$0xff]  ;;  %v810_v9 = vld [vmem:[%s3452_s5 + $0x298] sm:$0xff]  ;;  %v809_v12 = vld [vmem:[%s3452_s5 + $0x290] sm:$0xff] }
 0x259   :  { %v1001_v15 = vrot.slane %v723_v14, %v2716_v23  ;;  %v994_v56 = vcombine.high %v723_v14, %v723_v14  ;;  %v843_v62 = vld [vmem:[%s3452_s5 + $0x3a0] sm:$0xff]  ;;  %v794_v10 = vld [vmem:[%s3452_s5 + $0x218] sm:$0xff]  ;;  %v793_v14 = vld [vmem:[%s3452_s5 + $0x210] sm:$0xff] }
 0x25a   :  { %v827_v11 = vld [vmem:[%s3452_s5 + $0x320] sm:$0xff]  ;;  %v842_v13 = vld [vmem:[%s3452_s5 + $0x398] sm:$0xff] }
 0x25b   :  { %v1009_v16 = vcombine.high %v1001_v15, %v1001_v15  ;;  %v1008_v17 = vrot.slane %v994_v56, %v2716_v23  ;;  %v725_v56 = vld [vmem:[#allocation6 + $0x10] sm:$0xff] }
 0x25c   :  { %v724_v19 = vld [vmem:[#allocation6 + $0x8] sm:$0xff] }
 0x25d   :  { %1142 = vmatprep.mubr.f32.mxu0 %v1009_v16  ;;  %v1010_v20 = vcombine.high %v1008_v17, %v1008_v17  ;;  %v2822_v22 = vrot.slane %v724_v19, %v2716_v23  ;;  %v1011_v24 = vcombine.high %v724_v19, %v724_v19  ;;  %v808_v16 = vld [vmem:[%s3452_s5 + $0x288] sm:$0xff]  ;;  %v825_v19 = vld [vmem:[%s3452_s5 + $0x310] sm:$0xff] }
 0x25e   :  { %1143 = vmatmul.mubr.f32.vlgmr.msra.gmra.mxu0 %v1001_v15  ;;  %v826_v15 = vld [vmem:[%s3452_s5 + $0x318] sm:$0xff] }
 0x25f   :  { %1885 = vmatpush3.msra.mxu0 %v806_v18  ;;  %1212 = vmatprep.mubr.f32.mxu1 %v1010_v20  ;;  %v1026_v26 = vcombine.high %v2822_v22, %v2822_v22  ;;  %v2836_v29 = vrot.slane %v1011_v24, %v2716_v23  ;;  %v792_v18 = vld [vmem:[%s3452_s5 + $0x208] sm:$0xff]  ;;  %v807_v20 = vld [vmem:[%s3452_s5 + $0x280] sm:$0xff]  ;;  %v1028_v24 = vcombine.high %v725_v56, %v725_v56 }
 0x260   :  { %1886 = vmatprep.subr.mxu0 %v821_v21  ;;  %1213 = vmatmul.mubr.f32.vlgmr.msra.gmra.mxu1 %v1008_v17  ;;  %v841_v17 = vld [vmem:[%s3452_s5 + $0x390] sm:$0xff]  ;;  %v840_v21 = vld [vmem:[%s3452_s5 + $0x388] sm:$0xff] }
 0x261   :  { %1282 = vmatprep.mubr.f32.mxu0 %v1026_v26  ;;  %1887 = vmatpush3.msra.mxu0 %v805_v25  ;;  %v1027_v31 = vcombine.high %v2836_v29, %v2836_v29  ;;  %v791_v25 = vld [vmem:[%s3452_s5 + $0x200] sm:$0xff]  ;;  %v824_v26 = vld [vmem:[%s3452_s5 + $0x308] sm:$0xff] }
 0x262   :  { %1920 = vmatpush3.msra.mxu1 %v838_v27  ;;  %1888 = vmatprep.subr.mxu0 %v820_v28  ;;  %v3006_v27 = vrot.slane %v725_v56, %v2716_v23  ;;  %v839_v28 = vld [vmem:[%s3452_s5 + $0x380] sm:$0xff]  ;;  %v874_v56 = vld [vmem:[%s3452_s5 + $0x498] sm:$0xff] }
 0x263   :  { %1921 = vmatprep.subr.mxu1 %v853_v30  ;;  %1352 = vmatprep.mubr.f32.mxu1 %v1027_v31  ;;  %v886_v30 = vld [vmem:[%s3452_s5 + $0x4f8] sm:$0xff]  ;;  %v823_v31 = vld [vmem:[%s3452_s5 + $0x300] sm:$0xff] }
 0x264   :  { %1889 = vmatpush3.msra.mxu0 %v804_v32  ;;  %1922 = vmatpush3.msra.mxu1 %v837_v33  ;;  %v870_v32 = vld [vmem:[%s3452_s5 + $0x478] sm:$0xff]  ;;  %v3021_v33 = vrot.slane %v1028_v24, %v2716_v23 }
 0x265   :  { %1890 = vmatprep.subr.mxu0 %v819_v34  ;;  %1923 = vmatprep.subr.mxu1 %v852_v35  ;;  %v1043_v34 = vcombine.high %v3006_v27, %v3006_v27  ;;  %v885_v35 = vld [vmem:[%s3452_s5 + $0x4f0] sm:$0xff]  ;;  %v890_v24 = vld [vmem:[%s3452_s5 + $0x518] sm:$0xff] }
 0x266   :  { %1891 = vmatpush3.msra.mxu0 %v803_v36  ;;  %1924 = vmatpush3.msra.mxu1 %v836_v37  ;;  %v918_v36 = vld [vmem:[%s3452_s5 + $0x5f8] sm:$0xff]  ;;  %v869_v37 = vld [vmem:[%s3452_s5 + $0x470] sm:$0xff] }
 0x267   :  { %1892 = vmatprep.subr.mxu0 %v818_v38  ;;  %1925 = vmatprep.subr.mxu1 %v851_v40  ;;  %v1044_v38 = vcombine.high %v3021_v33, %v3021_v33  ;;  %v884_v40 = vld [vmem:[%s3452_s5 + $0x4e8] sm:$0xff] }
 0x268   :  { %1893 = vmatpush3.msra.mxu0 %v802_v41  ;;  %1926 = vmatpush3.msra.mxu1 %v835_v39  ;;  %v917_v41 = vld [vmem:[%s3452_s5 + $0x5f0] sm:$0xff]  ;;  %v868_v39 = vld [vmem:[%s3452_s5 + $0x468] sm:$0xff] }
 0x269   :  { %1894 = vmatprep.subr.mxu0 %v817_v42  ;;  %1927 = vmatprep.subr.mxu1 %v850_v43  ;;  %v883_v42 = vld [vmem:[%s3452_s5 + $0x4e0] sm:$0xff]  ;;  %v916_v43 = vld [vmem:[%s3452_s5 + $0x5e8] sm:$0xff] }
 0x26a   :  { %1895 = vmatpush3.msra.mxu0 %v801_v44  ;;  %1928 = vmatpush3.msra.mxu1 %v834_v45  ;;  %v867_v44 = vld [vmem:[%s3452_s5 + $0x460] sm:$0xff]  ;;  %v900_v45 = vld [vmem:[%s3452_s5 + $0x568] sm:$0xff] }
 0x26b   :  { %1896 = vmatprep.subr.mxu0 %v816_v48  ;;  %1929 = vmatprep.subr.mxu1 %v849_v49  ;;  %v882_v48 = vld [vmem:[%s3452_s5 + $0x4d8] sm:$0xff]  ;;  %v915_v49 = vld [vmem:[%s3452_s5 + $0x5e0] sm:$0xff] }
 0x26c   :  { %1897 = vmatpush3.msra.mxu0 %v800_v50  ;;  %1930 = vmatpush3.msra.mxu1 %v833_v51  ;;  %v866_v50 = vld [vmem:[%s3452_s5 + $0x458] sm:$0xff]  ;;  %v899_v51 = vld [vmem:[%s3452_s5 + $0x560] sm:$0xff] }
 0x26d   :  { %1898 = vmatprep.subr.mxu0 %v815_v52  ;;  %1931 = vmatprep.subr.mxu1 %v848_v53  ;;  %v881_v52 = vld [vmem:[%s3452_s5 + $0x4d0] sm:$0xff]  ;;  %v914_v53 = vld [vmem:[%s3452_s5 + $0x5d8] sm:$0xff] }
 0x26e   :  { %1899 = vmatpush3.msra.mxu0 %v799_v57  ;;  %1932 = vmatpush3.msra.mxu1 %v832_v58  ;;  %v865_v57 = vld [vmem:[%s3452_s5 + $0x450] sm:$0xff]  ;;  %v898_v58 = vld [vmem:[%s3452_s5 + $0x558] sm:$0xff] }
 0x26f   :  { %1900 = vmatprep.subr.mxu0 %v814_v46  ;;  %1933 = vmatprep.subr.mxu1 %v847_v54  ;;  %v880_v46 = vld [vmem:[%s3452_s5 + $0x4c8] sm:$0xff]  ;;  %v913_v54 = vld [vmem:[%s3452_s5 + $0x5d0] sm:$0xff] }
 0x270   :  { %1901 = vmatpush3.msra.mxu0 %v798_v59  ;;  %1934 = vmatpush3.msra.mxu1 %v831_v60  ;;  %v864_v59 = vld [vmem:[%s3452_s5 + $0x448] sm:$0xff]  ;;  %v897_v60 = vld [vmem:[%s3452_s5 + $0x550] sm:$0xff] }
 0x271   :  { %1902 = vmatprep.subr.mxu0 %v813_v61  ;;  %1935 = vmatprep.subr.mxu1 %v846_v63  ;;  %v879_v61 = vld [vmem:[%s3452_s5 + $0x4c0] sm:$0xff]  ;;  %v912_v63 = vld [vmem:[%s3452_s5 + $0x5c8] sm:$0xff] }
 0x272   :  { %1903 = vmatpush3.msra.mxu0 %v797_v0  ;;  %1936 = vmatpush3.msra.mxu1 %v830_v1  ;;  %v863_v0 = vld [vmem:[%s3452_s5 + $0x440] sm:$0xff]  ;;  %v896_v1 = vld [vmem:[%s3452_s5 + $0x548] sm:$0xff] }
 0x273   :  { %1904 = vmatprep.subr.mxu0 %v812_v2  ;;  %1937 = vmatprep.subr.mxu1 %v845_v55  ;;  %v878_v2 = vld [vmem:[%s3452_s5 + $0x4b8] sm:$0xff]  ;;  %v911_v55 = vld [vmem:[%s3452_s5 + $0x5c0] sm:$0xff] }
 0x274   :  { %1905 = vmatpush3.msra.mxu0 %v796_v3  ;;  %1938 = vmatpush3.msra.mxu1 %v829_v5  ;;  %v862_v3 = vld [vmem:[%s3452_s5 + $0x438] sm:$0xff]  ;;  %v895_v5 = vld [vmem:[%s3452_s5 + $0x540] sm:$0xff] }
 0x275   :  { %1906 = vmatprep.subr.mxu0 %v811_v6  ;;  %1939 = vmatprep.subr.mxu1 %v844_v7  ;;  %v877_v6 = vld [vmem:[%s3452_s5 + $0x4b0] sm:$0xff]  ;;  %v910_v7 = vld [vmem:[%s3452_s5 + $0x5b8] sm:$0xff] }
 0x276   :  { %1907 = vmatpush3.msra.mxu0 %v795_v8  ;;  %1940 = vmatpush3.msra.mxu1 %v828_v47  ;;  %v861_v8 = vld [vmem:[%s3452_s5 + $0x430] sm:$0xff]  ;;  %v894_v47 = vld [vmem:[%s3452_s5 + $0x538] sm:$0xff] }
 0x277   :  { %1908 = vmatprep.subr.mxu0 %v810_v9  ;;  %1941 = vmatprep.subr.mxu1 %v843_v62  ;;  %v876_v9 = vld [vmem:[%s3452_s5 + $0x4a8] sm:$0xff]  ;;  %v909_v62 = vld [vmem:[%s3452_s5 + $0x5b0] sm:$0xff] }
 0x278   :  { %1909 = vmatpush3.msra.mxu0 %v794_v10  ;;  %1942 = vmatpush3.msra.mxu1 %v827_v11  ;;  %v860_v10 = vld [vmem:[%s3452_s5 + $0x428] sm:$0xff]  ;;  %v893_v11 = vld [vmem:[%s3452_s5 + $0x530] sm:$0xff] }
 0x279   :  { %1910 = vmatprep.subr.mxu0 %v809_v12  ;;  %1943 = vmatprep.subr.mxu1 %v842_v13  ;;  %v875_v12 = vld [vmem:[%s3452_s5 + $0x4a0] sm:$0xff]  ;;  %v908_v13 = vld [vmem:[%s3452_s5 + $0x5a8] sm:$0xff] }
 0x27a   :  { %1911 = vmatpush3.msra.mxu0 %v793_v14  ;;  %1944 = vmatpush3.msra.mxu1 %v826_v15  ;;  %v859_v14 = vld [vmem:[%s3452_s5 + $0x420] sm:$0xff]  ;;  %v892_v15 = vld [vmem:[%s3452_s5 + $0x528] sm:$0xff] }
 0x27b   :  { %1912 = vmatprep.subr.mxu0 %v808_v16  ;;  %1945 = vmatprep.subr.mxu1 %v841_v17  ;;  %v907_v16 = vld [vmem:[%s3452_s5 + $0x5a0] sm:$0xff]  ;;  %v858_v17 = vld [vmem:[%s3452_s5 + $0x418] sm:$0xff] }
 0x27c   :  { %1913 = vmatpush3.msra.mxu0 %v792_v18  ;;  %1946 = vmatpush3.msra.mxu1 %v825_v19  ;;  %v891_v18 = vld [vmem:[%s3452_s5 + $0x520] sm:$0xff]  ;;  %v873_v19 = vld [vmem:[%s3452_s5 + $0x490] sm:$0xff] }
 0x27d   :  { %1914 = vmatprep.subr.mxu0 %v807_v20  ;;  %1947 = vmatprep.subr.mxu1 %v840_v21  ;;  %v906_v20 = vld [vmem:[%s3452_s5 + $0x598] sm:$0xff]  ;;  %v857_v21 = vld [vmem:[%s3452_s5 + $0x410] sm:$0xff] }
 0x27e   :  { %1915 = vmatpush3.msra.mxu0 %v791_v25  ;;  %1948 = vmatpush3.msra.mxu1 %v824_v26  ;;  %v726_v25 = vld [vmem:[#allocation6 + $0x18] sm:$0xff]  ;;  %v872_v26 = vld [vmem:[%s3452_s5 + $0x488] sm:$0xff] }
 0x27f   :  { %1283 = vmatmul.mubr.f32.vlgmr.msra.gmra.mxu0 %v2822_v22  ;;  %1949 = vmatprep.subr.mxu1 %v839_v28  ;;  %v902_v22 = vld [vmem:[%s3452_s5 + $0x578] sm:$0xff]  ;;  %v905_v28 = vld [vmem:[%s3452_s5 + $0x590] sm:$0xff] }
 0x280   :  { %1954 = vmatprep.subr.mxu0 %v886_v30  ;;  %1950 = vmatpush3.msra.mxu1 %v823_v31  ;;  %v856_v30 = vld [vmem:[%s3452_s5 + $0x408] sm:$0xff]  ;;  %v889_v31 = vld [vmem:[%s3452_s5 + $0x510] sm:$0xff] }
 0x281   :  { %1955 = vmatpush3.msra.mxu0 %v870_v32  ;;  %1422 = vmatprep.mubr.f32.mxu0 %v1043_v34  ;;  %v871_v32 = vld [vmem:[%s3452_s5 + $0x480] sm:$0xff]  ;;  %v904_v34 = vld [vmem:[%s3452_s5 + $0x588] sm:$0xff] }
 0x282   :  { %1353 = vmatmul.mubr.f32.vlgmr.msra.gmra.mxu1 %v2836_v29  ;;  %1956 = vmatprep.subr.mxu0 %v885_v35  ;;  %v901_v29 = vld [vmem:[%s3452_s5 + $0x570] sm:$0xff]  ;;  %v1045_v35 = vcombine.high %v726_v25, %v726_v25 }
 0x283   :  { %1989 = vmatprep.subr.mxu1 %v918_v36  ;;  %1957 = vmatpush3.msra.mxu0 %v869_v37  ;;  %v855_v36 = vld [vmem:[%s3452_s5 + $0x400] sm:$0xff]  ;;  %v888_v37 = vld [vmem:[%s3452_s5 + $0x508] sm:$0xff] }
 0x284   :  { %1990 = vmatpush3.msra.mxu1 %v902_v22  ;;  %1492 = vmatprep.mubr.f32.mxu1 %v1044_v38  ;;  %v3210_v22 = vrot.slane %v726_v25, %v2716_v23  ;;  %v903_v38 = vld [vmem:[%s3452_s5 + $0x580] sm:$0xff] }
 0x285   :  { %1958 = vmatprep.subr.mxu0 %v884_v40  ;;  %1991 = vmatprep.subr.mxu1 %v917_v41  ;;  %v950_v40 = vld [vmem:[%s3452_s5 + $0x6f8] sm:$0xff]  ;;  %v887_v41 = vld [vmem:[%s3452_s5 + $0x500] sm:$0xff] }
 0x286   :  { %1959 = vmatpush3.msra.mxu0 %v868_v39  ;;  %1992 = vmatpush3.msra.mxu1 %v901_v29  ;;  %v934_v39 = vld [vmem:[%s3452_s5 + $0x678] sm:$0xff]  ;;  %v3225_v29 = vrot.slane %v1045_v35, %v2716_v23  ;;  %v933_v23 = vld [vmem:[%s3452_s5 + $0x670] sm:$0xff]  ;;  %v971_v25 = vld [vmem:[%s3452_s5 + $0x7a0] sm:$0xff] }
 0x287   :  { %1960 = vmatprep.subr.mxu0 %v883_v42  ;;  %1993 = vmatprep.subr.mxu1 %v916_v43  ;;  %v1060_v42 = vcombine.high %v3210_v22, %v3210_v22  ;;  %v949_v43 = vld [vmem:[%s3452_s5 + $0x6f0] sm:$0xff]  ;;  %v936_v35 = vld [vmem:[%s3452_s5 + $0x688] sm:$0xff] }
 0x288   :  { %1961 = vmatpush3.msra.mxu0 %v867_v44  ;;  %1994 = vmatpush3.msra.mxu1 %v900_v45  ;;  %v982_v44 = vld [vmem:[%s3452_s5 + $0x7f8] sm:$0xff]  ;;  %v1061_v45 = vcombine.high %v3225_v29, %v3225_v29 }
 0x289   :  { %1962 = vmatprep.subr.mxu0 %v882_v48  ;;  %1995 = vmatprep.subr.mxu1 %v915_v49  ;;  %v948_v48 = vld [vmem:[%s3452_s5 + $0x6e8] sm:$0xff]  ;;  %v981_v49 = vld [vmem:[%s3452_s5 + $0x7f0] sm:$0xff] }
 0x28a   :  { %1963 = vmatpush3.msra.mxu0 %v866_v50  ;;  %1996 = vmatpush3.msra.mxu1 %v899_v51  ;;  %v932_v50 = vld [vmem:[%s3452_s5 + $0x668] sm:$0xff]  ;;  %v947_v51 = vld [vmem:[%s3452_s5 + $0x6e0] sm:$0xff] }
 0x28b   :  { %1964 = vmatprep.subr.mxu0 %v881_v52  ;;  %1997 = vmatprep.subr.mxu1 %v914_v53  ;;  %v980_v52 = vld [vmem:[%s3452_s5 + $0x7e8] sm:$0xff]  ;;  %v931_v53 = vld [vmem:[%s3452_s5 + $0x660] sm:$0xff] }
 0x28c   :  { %1965 = vmatpush3.msra.mxu0 %v865_v57  ;;  %1998 = vmatpush3.msra.mxu1 %v898_v58  ;;  %v964_v57 = vld [vmem:[%s3452_s5 + $0x768] sm:$0xff]  ;;  %v946_v58 = vld [vmem:[%s3452_s5 + $0x6d8] sm:$0xff] }
 0x28d   :  { %1966 = vmatprep.subr.mxu0 %v880_v46  ;;  %1999 = vmatprep.subr.mxu1 %v913_v54  ;;  %v979_v46 = vld [vmem:[%s3452_s5 + $0x7e0] sm:$0xff]  ;;  %v930_v54 = vld [vmem:[%s3452_s5 + $0x658] sm:$0xff] }
 0x28e   :  { %1967 = vmatpush3.msra.mxu0 %v864_v59  ;;  %2000 = vmatpush3.msra.mxu1 %v897_v60  ;;  %v963_v59 = vld [vmem:[%s3452_s5 + $0x760] sm:$0xff]  ;;  %v945_v60 = vld [vmem:[%s3452_s5 + $0x6d0] sm:$0xff] }
 0x28f   :  { %1968 = vmatprep.subr.mxu0 %v879_v61  ;;  %2001 = vmatprep.subr.mxu1 %v912_v63  ;;  %v978_v61 = vld [vmem:[%s3452_s5 + $0x7d8] sm:$0xff]  ;;  %v929_v63 = vld [vmem:[%s3452_s5 + $0x650] sm:$0xff] }
 0x290   :  { %1969 = vmatpush3.msra.mxu0 %v863_v0  ;;  %2002 = vmatpush3.msra.mxu1 %v896_v1  ;;  %v962_v0 = vld [vmem:[%s3452_s5 + $0x758] sm:$0xff]  ;;  %v944_v1 = vld [vmem:[%s3452_s5 + $0x6c8] sm:$0xff] }
 0x291   :  { %1970 = vmatprep.subr.mxu0 %v878_v2  ;;  %2003 = vmatprep.subr.mxu1 %v911_v55  ;;  %v977_v2 = vld [vmem:[%s3452_s5 + $0x7d0] sm:$0xff]  ;;  %v928_v55 = vld [vmem:[%s3452_s5 + $0x648] sm:$0xff] }
 0x292   :  { %1971 = vmatpush3.msra.mxu0 %v862_v3  ;;  %2004 = vmatpush3.msra.mxu1 %v895_v5  ;;  %v961_v3 = vld [vmem:[%s3452_s5 + $0x750] sm:$0xff]  ;;  %v943_v5 = vld [vmem:[%s3452_s5 + $0x6c0] sm:$0xff] }
 0x293   :  { %1972 = vmatprep.subr.mxu0 %v877_v6  ;;  %2005 = vmatprep.subr.mxu1 %v910_v7  ;;  %v976_v6 = vld [vmem:[%s3452_s5 + $0x7c8] sm:$0xff]  ;;  %v927_v7 = vld [vmem:[%s3452_s5 + $0x640] sm:$0xff] }
 0x294   :  { %1973 = vmatpush3.msra.mxu0 %v861_v8  ;;  %2006 = vmatpush3.msra.mxu1 %v894_v47  ;;  %v960_v8 = vld [vmem:[%s3452_s5 + $0x748] sm:$0xff]  ;;  %v942_v47 = vld [vmem:[%s3452_s5 + $0x6b8] sm:$0xff] }
 0x295   :  { %1974 = vmatprep.subr.mxu0 %v876_v9  ;;  %2007 = vmatprep.subr.mxu1 %v909_v62  ;;  %v975_v9 = vld [vmem:[%s3452_s5 + $0x7c0] sm:$0xff]  ;;  %v926_v62 = vld [vmem:[%s3452_s5 + $0x638] sm:$0xff] }
 0x296   :  { %1975 = vmatpush3.msra.mxu0 %v860_v10  ;;  %2008 = vmatpush3.msra.mxu1 %v893_v11  ;;  %v959_v10 = vld [vmem:[%s3452_s5 + $0x740] sm:$0xff]  ;;  %v941_v11 = vld [vmem:[%s3452_s5 + $0x6b0] sm:$0xff] }
 0x297   :  { %1976 = vmatprep.subr.mxu0 %v875_v12  ;;  %2009 = vmatprep.subr.mxu1 %v908_v13  ;;  %v974_v12 = vld [vmem:[%s3452_s5 + $0x7b8] sm:$0xff]  ;;  %v925_v13 = vld [vmem:[%s3452_s5 + $0x630] sm:$0xff] }
 0x298   :  { %1977 = vmatpush3.msra.mxu0 %v859_v14  ;;  %2010 = vmatpush3.msra.mxu1 %v892_v15  ;;  %v958_v14 = vld [vmem:[%s3452_s5 + $0x738] sm:$0xff]  ;;  %v940_v15 = vld [vmem:[%s3452_s5 + $0x6a8] sm:$0xff] }
 0x299   :  { %1978 = vmatprep.subr.mxu0 %v874_v56  ;;  %2011 = vmatprep.subr.mxu1 %v907_v16  ;;  %v973_v56 = vld [vmem:[%s3452_s5 + $0x7b0] sm:$0xff]  ;;  %v924_v16 = vld [vmem:[%s3452_s5 + $0x628] sm:$0xff] }
 0x29a   :  { %1979 = vmatpush3.msra.mxu0 %v858_v17  ;;  %2012 = vmatpush3.msra.mxu1 %v891_v18  ;;  %v957_v17 = vld [vmem:[%s3452_s5 + $0x730] sm:$0xff]  ;;  %v939_v18 = vld [vmem:[%s3452_s5 + $0x6a0] sm:$0xff] }
 0x29b   :  { %1980 = vmatprep.subr.mxu0 %v873_v19  ;;  %2013 = vmatprep.subr.mxu1 %v906_v20  ;;  %v972_v19 = vld [vmem:[%s3452_s5 + $0x7a8] sm:$0xff]  ;;  %v923_v20 = vld [vmem:[%s3452_s5 + $0x620] sm:$0xff] }
 0x29c   :  { %1981 = vmatpush3.msra.mxu0 %v857_v21  ;;  %2014 = vmatpush3.msra.mxu1 %v890_v24  ;;  %v956_v21 = vld [vmem:[%s3452_s5 + $0x728] sm:$0xff]  ;;  %v938_v24 = vld [vmem:[%s3452_s5 + $0x698] sm:$0xff] }
 0x29d   :  { %1982 = vmatprep.subr.mxu0 %v872_v26  ;;  %2015 = vmatprep.subr.mxu1 %v905_v28  ;;  %v922_v26 = vld [vmem:[%s3452_s5 + $0x618] sm:$0xff]  ;;  %v955_v28 = vld [vmem:[%s3452_s5 + $0x720] sm:$0xff] }
 0x29e   :  { %1983 = vmatpush3.msra.mxu0 %v856_v30  ;;  %2016 = vmatpush3.msra.mxu1 %v889_v31  ;;  %v937_v30 = vld [vmem:[%s3452_s5 + $0x690] sm:$0xff]  ;;  %v970_v31 = vld [vmem:[%s3452_s5 + $0x798] sm:$0xff] }
 0x29f   :  { %1984 = vmatprep.subr.mxu0 %v871_v32  ;;  %2017 = vmatprep.subr.mxu1 %v904_v34  ;;  %v921_v32 = vld [vmem:[%s3452_s5 + $0x610] sm:$0xff]  ;;  %v954_v34 = vld [vmem:[%s3452_s5 + $0x718] sm:$0xff] }
 0x2a0   :  { %1985 = vmatpush3.msra.mxu0 %v855_v36  ;;  %2018 = vmatpush3.msra.mxu1 %v888_v37  ;;  %v969_v36 = vld [vmem:[%s3452_s5 + $0x790] sm:$0xff]  ;;  %v920_v37 = vld [vmem:[%s3452_s5 + $0x608] sm:$0xff] }
 0x2a1   :  { %1423 = vmatmul.mubr.f32.vlgmr.msra.gmra.mxu0 %v3006_v27  ;;  %2019 = vmatprep.subr.mxu1 %v903_v38  ;;  %v966_v27 = vld [vmem:[%s3452_s5 + $0x778] sm:$0xff]  ;;  %v953_v38 = vld [vmem:[%s3452_s5 + $0x710] sm:$0xff] }
 0x2a2   :  { %2024 = vmatprep.subr.mxu0 %v950_v40  ;;  %2020 = vmatpush3.msra.mxu1 %v887_v41  ;;  %v935_v40 = vld [vmem:[%s3452_s5 + $0x680] sm:$0xff]  ;;  %v968_v41 = vld [vmem:[%s3452_s5 + $0x788] sm:$0xff] }
 0x2a3   :  { %2025 = vmatpush3.msra.mxu0 %v934_v39  ;;  %1562 = vmatprep.mubr.f32.mxu0 %v1060_v42  ;;  %v919_v39 = vld [vmem:[%s3452_s5 + $0x600] sm:$0xff]  ;;  %v952_v42 = vld [vmem:[%s3452_s5 + $0x708] sm:$0xff] }
 0x2a4   :  { %1493 = vmatmul.mubr.f32.vlgmr.msra.gmra.mxu1 %v3021_v33  ;;  %2026 = vmatprep.subr.mxu0 %v949_v43  ;;  %v965_v33 = vld [vmem:[%s3452_s5 + $0x770] sm:$0xff]  ;;  %v967_v43 = vld [vmem:[%s3452_s5 + $0x780] sm:$0xff] }
 0x2a5   :  { %2059 = vmatprep.subr.mxu1 %v982_v44  ;;  %2027 = vmatpush3.msra.mxu0 %v933_v23  ;;  %v951_v44 = vld [vmem:[%s3452_s5 + $0x700] sm:$0xff]  ;;  %v1642_v23 = vld [vmem:[%s3454_s7 + $0x18] sm:$0xff] }
 0x2a6   :  { %2060 = vmatpush3.msra.mxu1 %v966_v27  ;;  %1632 = vmatprep.mubr.f32.mxu1 %v1061_v45  ;;  %v1641_v27 = vld [vmem:[%s3454_s7 + $0x10] sm:$0xff] }
 0x2a7   :  { %2028 = vmatprep.subr.mxu0 %v948_v48  ;;  %2061 = vmatprep.subr.mxu1 %v981_v49 }
 0x2a8   :  { %2029 = vmatpush3.msra.mxu0 %v932_v50  ;;  %2062 = vmatpush3.msra.mxu1 %v965_v33 }
 0x2a9   :  { %2030 = vmatprep.subr.mxu0 %v947_v51  ;;  %2063 = vmatprep.subr.mxu1 %v980_v52  ;;  %v1747_v51 = vld [vmem:[%s3453_s6] ss:$0 sm:$0xff] }
 0x2aa   :  { %2031 = vmatpush3.msra.mxu0 %v931_v53  ;;  %2064 = vmatpush3.msra.mxu1 %v964_v57 }
 0x2ab   :  { %2032 = vmatprep.subr.mxu0 %v946_v58  ;;  %2065 = vmatprep.subr.mxu1 %v979_v46 }
 0x2ac   :  { %2033 = vmatpush3.msra.mxu0 %v930_v54  ;;  %2066 = vmatpush3.msra.mxu1 %v963_v59 }
 0x2ad   :  { %2034 = vmatprep.subr.mxu0 %v945_v60  ;;  %2067 = vmatprep.subr.mxu1 %v978_v61 }
 0x2ae   :  { %2035 = vmatpush3.msra.mxu0 %v929_v63  ;;  %2068 = vmatpush3.msra.mxu1 %v962_v0 }
 0x2af   :  { %2036 = vmatprep.subr.mxu0 %v944_v1  ;;  %2069 = vmatprep.subr.mxu1 %v977_v2 }
 0x2b0   :  { %2037 = vmatpush3.msra.mxu0 %v928_v55  ;;  %2070 = vmatpush3.msra.mxu1 %v961_v3 }
 0x2b1   :  { %2038 = vmatprep.subr.mxu0 %v943_v5  ;;  %2071 = vmatprep.subr.mxu1 %v976_v6 }
 0x2b2   :  { %2039 = vmatpush3.msra.mxu0 %v927_v7  ;;  %2072 = vmatpush3.msra.mxu1 %v960_v8 }
 0x2b3   :  { %2040 = vmatprep.subr.mxu0 %v942_v47  ;;  %2073 = vmatprep.subr.mxu1 %v975_v9 }
 0x2b4   :  { %2041 = vmatpush3.msra.mxu0 %v926_v62  ;;  %2074 = vmatpush3.msra.mxu1 %v959_v10 }
 0x2b5   :  { %2042 = vmatprep.subr.mxu0 %v941_v11  ;;  %2075 = vmatprep.subr.mxu1 %v974_v12 }
 0x2b6   :  { %2043 = vmatpush3.msra.mxu0 %v925_v13  ;;  %2076 = vmatpush3.msra.mxu1 %v958_v14 }
 0x2b7   :  { %2044 = vmatprep.subr.mxu0 %v940_v15  ;;  %2077 = vmatprep.subr.mxu1 %v973_v56  ;;  %v1748_v15 = vld [vmem:[%s3455_s8] ss:$0 sm:$0xff] }
 0x2b8   :  { %2045 = vmatpush3.msra.mxu0 %v924_v16  ;;  %2078 = vmatpush3.msra.mxu1 %v957_v17 }
 0x2b9   :  { %2046 = vmatprep.subr.mxu0 %v939_v18  ;;  %2079 = vmatprep.subr.mxu1 %v972_v19 }
 0x2ba   :  { %2047 = vmatpush3.msra.mxu0 %v923_v20  ;;  %2080 = vmatpush3.msra.mxu1 %v956_v21 }
 0x2bb   :  { %2048 = vmatprep.subr.mxu0 %v938_v24  ;;  %2081 = vmatprep.subr.mxu1 %v971_v25 }
 0x2bc   :  { %2049 = vmatpush3.msra.mxu0 %v922_v26  ;;  %2082 = vmatpush3.msra.mxu1 %v955_v28 }
 0x2bd   :  { %2050 = vmatprep.subr.mxu0 %v937_v30  ;;  %2083 = vmatprep.subr.mxu1 %v970_v31 }
 0x2be   :  { %2051 = vmatpush3.msra.mxu0 %v921_v32  ;;  %2084 = vmatpush3.msra.mxu1 %v954_v34 }
 0x2bf   :  { %2052 = vmatprep.subr.mxu0 %v936_v35  ;;  %2085 = vmatprep.subr.mxu1 %v969_v36 }
 0x2c0   :  { %2053 = vmatpush3.msra.mxu0 %v920_v37  ;;  %2086 = vmatpush3.msra.mxu1 %v953_v38 }
 0x2c1   :  { %2054 = vmatprep.subr.mxu0 %v935_v40  ;;  %2087 = vmatprep.subr.mxu1 %v968_v41 }
 0x2c2   :  { %2055 = vmatpush3.msra.mxu0 %v919_v39  ;;  %2088 = vmatpush3.msra.mxu1 %v952_v42 }
 0x2c3   :  { %1563 = vmatmul.mubr.f32.vlgmr.msra.gmra.mxu0 %v3210_v22  ;;  %2089 = vmatprep.subr.mxu1 %v967_v43  ;;  %v1640_v22 = vld [vmem:[%s3454_s7 + $0x8] sm:$0xff] }
 0x2c4   :  { %2090 = vmatpush3.msra.mxu1 %v951_v44  ;;  %2137 = vmatprep.subr.mxu0 %v2181_v4 }
 0x2c5   :  { %1633 = vmatmul.mubr.f32.vlgmr.msra.gmra.mxu1 %v3225_v29  ;;  %2138 = vmatpush3.msra.mxu0 %v1642_v23  ;;  %v1639_v29 = vld [vmem:[%s3454_s7] sm:$0xff] }
 0x2c6   :  { %2139 = vmatprep.subr.mxu0 %v2181_v4  ;;  %2145 = vmatprep.mubr.msk.f32.mxu0 %vm2184_vm7, %v2181_v4 }
 0x2c7   :  { %2140 = vmatpush3.msra.mxu0 %v1641_v27 }
 0x2c8   :  { %2141 = vmatprep.subr.mxu0 %v2181_v4 }
 0x2c9   :  { %2142 = vmatpush3.msra.mxu0 %v1640_v22 }
 0x2ca   :  { %2143 = vmatprep.subr.mxu0 %v2181_v4 }
 0x2cb   :  { %2144 = vmatpush3.msra.mxu0 %v1639_v29 }
 0x31e   :  { %v1846_v45 = vpop.f32.mrf.mxu0 }
 0x320   :  { %v1847_v48 = vpop.f32.mrf.mxu0  ;;  %v1881_v49 = vpop.f32.mrf.mxu1 }
 0x321   :  { %v1848_v33 = vadd.f32 %v1847_v48, %v1846_v45 }
 0x322   :  { %v1882_v52 = vpop.f32.mrf.mxu1 }
 0x323   :  { %v1145_v58 = vadd.f32 %v1848_v33, %v1747_v51  ;;  %v1883_v46 = vadd.f32 %v1882_v52, %v1881_v49 }
 0x325   :  { %v1215_v61 = vadd.f32 %v1883_v46, %v1145_v58 }
 0x33f   :  { %v1916_v50 = vpop.f32.mrf.mxu0 }
 0x341   :  { %v1917_v53 = vpop.f32.mrf.mxu0 }
 0x342   :  { %v1951_v57 = vpop.f32.mrf.mxu1  ;;  %v1918_v59 = vadd.f32 %v1917_v53, %v1916_v50 }
 0x344   :  { %v1952_v60 = vpop.f32.mrf.mxu1  ;;  %v1285_v0 = vadd.f32 %v1918_v59, %v1215_v61 }
 0x345   :  { %v1953_v1 = vadd.f32 %v1952_v60, %v1951_v57 }
 0x347   :  { %v1355_v3 = vadd.f32 %v1953_v1, %v1285_v0 }
 0x361   :  { %v1986_v54 = vpop.f32.mrf.mxu0 }
 0x363   :  { %v1987_v63 = vpop.f32.mrf.mxu0 }
 0x364   :  { %v2021_v4 = vpop.f32.mrf.mxu1  ;;  %v1988_v2 = vadd.f32 %v1987_v63, %v1986_v54 }
 0x366   :  { %v2022_v55 = vpop.f32.mrf.mxu1  ;;  %v1425_v5 = vadd.f32 %v1988_v2, %v1355_v3 }
 0x367   :  { %v2023_v6 = vadd.f32 %v2022_v55, %v2021_v4 }
 0x369   :  { %v1495_v9 = vadd.f32 %v2023_v6, %v1425_v5 }
 0x383   :  { %v2056_v7 = vpop.f32.mrf.mxu0 }
 0x385   :  { %v2057_v8 = vpop.f32.mrf.mxu0  ;;  %v2091_v47 = vpop.f32.mrf.mxu1 }
 0x386   :  { %v2058_v62 = vadd.f32 %v2057_v8, %v2056_v7 }
 0x387   :  { %v2092_v10 = vpop.f32.mrf.mxu1 }
 0x388   :  { %v1565_v11 = vadd.f32 %v2058_v62, %v1495_v9  ;;  %v2093_v12 = vadd.f32 %v2092_v10, %v2091_v47 }
 0x38a   :  { %v1635_v13 = vadd.f32 %v2093_v12, %v1565_v11 }
 0x38c   :  { %v1638_v14 = vmax.f32 %v1635_v13, 0.0 }
 0x38e   :  { %2146 = vmatmul.mubr.msk.f32.vlgmr.msra.gmra.mxu0 %vm1650_vm8, %v1638_v14 }
 0x44e   :  { %v1720_v56 = vpop.f32.mrf.mxu0 }
 0x44f   :  { %v1721_v16 = vadd.f32 %v1748_v15, %v1720_v56 }
 0x450   :  { %v2147_v17 = vpop.f32.mrf.mxu0 }
 0x451   :  { %2157 = vtanh.f32 %v1721_v16 }
 0x45e   :  { %v2158_v18 = vpop.eup %2157 }
 0x45f   :  { %1726 = vst.msk [vmem:[#allocation7] sm:$0x3] %vm1725_vm9, %v2158_v18 }
 0x460   :  { %2170 = shalt.err (!%p2167_p4)
}
 0x461   :  { %1736 = dma.vmem_to_hbm [thread:$0]  %s1734_s4, 32, %s3456_s9, [#allocation8]  }
 0x462   :  { %2179 = dma.done.wait [#allocation8], 32  }
 0x463   :  { %2180 = vsyncadd [#allocation8], 4294967264 }
 0x464   :  { %1740 = vsyncpa [#allocation8], 1 }

</bundles_post_ra>
